<compile_context>
chip_gen: v7x
topology: tpu7x:2x2x1
jax: 0.10.0
libtpu: 0.0.40
codegen_flags: <defaults>
</compile_context>

<pallas_src>
import jax
import jax.numpy as jnp
from jax.experimental import pallas as pl
from jax.experimental.pallas import tpu as pltpu

FEAT_DIM = 128  # surrogate backbone.num_features


def _pick_spatial_tile(hw, target=512):
    """Largest multiple-of-8 divisor of hw that is <= target (else full hw)."""
    if hw <= target:
        return hw
    for t in range(target, 7, -8):
        if hw % t == 0:
            return t
    return hw


def glaucomanet_forward(x_nchw, params, spatial_tile=None):
    (w_stem, b_stem, w1, b1, w2, b2, w3, b3, w4, b4) = params
    B, C, H, W = x_nchw.shape
    HW = H * W
    tile_s = spatial_tile or _pick_spatial_tile(HW)
    assert HW % tile_s == 0, (HW, tile_s)
    n_s = HW // tile_s
    F = w_stem.shape[1]
    inv_hw = 1.0 / HW

    # NCHW -> [B, HW, C], bf16 to halve HBM traffic of the dominant input.
    x_bsc = jnp.transpose(x_nchw, (0, 2, 3, 1)).reshape(B, HW, C)
    x_bsc = x_bsc.astype(jnp.bfloat16)

    def kernel(x_ref, ws_ref, bs_ref,
               w1_ref, b1_ref, w2_ref, b2_ref, w3_ref, b3_ref, w4_ref, b4_ref,
               out_ref, acc_ref):
        s_idx = pl.program_id(1)

        @pl.when(s_idx == 0)
        def _init():
            acc_ref[...] = jnp.zeros_like(acc_ref)

        # ---- surrogate backbone tile: 1x1-conv stem (K=4, unrolled on the
        # VPU), ReLU, partial sum for the global average pool. ----
        x = x_ref[...].astype(jnp.float32)        # (tile_s, C)
        w = ws_ref[...].astype(jnp.float32)       # (C, F)
        cdim = x.shape[1]
        h = x[:, 0:1] * w[0:1, :]
        for c in range(1, cdim):
            h = h + x[:, c:c + 1] * w[c:c + 1, :]
        h = jnp.maximum(h + bs_ref[...], 0.0)     # bias + ReLU, (tile_s, F)
        acc_ref[...] += jnp.sum(h, axis=0, keepdims=True)

        # ---- fused MLP head on the pooled features (last spatial step). ----
        @pl.when(s_idx == n_s - 1)
        def _head():
            def leaky(v):
                return jnp.where(v > 0, v, 0.1 * v)

            def lin(v, w_r, b_r):
                return jnp.dot(v.astype(jnp.bfloat16), w_r[...],
                               preferred_element_type=jnp.float32) + b_r[...]

            feat = acc_ref[...] * inv_hw                      # (1, F) f32
            hh = leaky(lin(feat, w1_ref, b1_ref))             # Linear+BN folded
            hh = leaky(lin(hh, w2_ref, b2_ref))               # Linear+BN folded
            hh = leaky(lin(hh, w3_ref, b3_ref))               # classifier[0]
            out_ref[...] = lin(hh, w4_ref, b4_ref)            # (1, 128) lane-dense

    def full_spec(shape):
        return pl.BlockSpec(shape, lambda b, s: (0,) * len(shape))

    out = pl.pallas_call(
        kernel,
        out_shape=jax.ShapeDtypeStruct((B, 1, 128), jnp.float32),
        grid_spec=pltpu.PrefetchScalarGridSpec(
            num_scalar_prefetch=0,
            grid=(B, n_s),
            in_specs=[
                pl.BlockSpec((None, tile_s, C), lambda b, s: (b, s, 0)),
                full_spec(w_stem.shape), full_spec(b_stem.shape),
                full_spec(w1.shape), full_spec(b1.shape),
                full_spec(w2.shape), full_spec(b2.shape),
                full_spec(w3.shape), full_spec(b3.shape),
                full_spec(w4.shape), full_spec(b4.shape),
            ],
            out_specs=pl.BlockSpec((None, 1, 128), lambda b, s: (b, 0, 0)),
            scratch_shapes=[pltpu.VMEM((1, F), jnp.float32)],
        ),
        compiler_params=pltpu.CompilerParams(
            dimension_semantics=("parallel", "arbitrary"),
            vmem_limit_bytes=32 * 1024 * 1024),
    )(x_bsc, w_stem, b_stem, w1, b1, w2, b2, w3, b3, w4, b4)

    return out[:, 0, :1]                                      # (B, 1)


# ----------------------------------------------------------------------------
# Deterministic parameter init (mirrors GlaucomaNet._initialize_weights),
# with eval-mode BN folded into the linears and bf16 weight storage.
# ----------------------------------------------------------------------------
def build_params(key, feat_dim=FEAT_DIM, in_ch=4):
    ks = jax.random.split(key, 5)

    def kaiming_fan_out(k, din, dout):
        # nn.init.kaiming_normal_(W, mode='fan_out', nonlinearity='leaky_relu')
        # default a=0 -> gain=sqrt(2), fan_out=dout.  Stored as (in, out).
        std = (2.0 ** 0.5) / (dout ** 0.5)
        return jax.random.normal(k, (din, dout), jnp.float32) * std

    w_stem = jax.random.normal(ks[0], (in_ch, feat_dim), jnp.float32) * 0.1
    b_stem = jnp.zeros((1, feat_dim), jnp.float32)

    w1 = kaiming_fan_out(ks[1], feat_dim, 512); b1 = jnp.full((1, 512), 0.1, jnp.float32)
    w2 = kaiming_fan_out(ks[2], 512, 256);      b2 = jnp.full((1, 256), 0.1, jnp.float32)
    w3 = kaiming_fan_out(ks[3], 256, 64);       b3 = jnp.full((1, 64), 0.1, jnp.float32)
    w4 = kaiming_fan_out(ks[4], 64, 1);         b4 = jnp.full((1, 1), 1.0, jnp.float32)

    # Fold BatchNorm1d (eval: gamma=1, beta=0, running_mean=0, running_var=1).
    def fold_bn(w, b, n, eps=1e-5):
        gamma = jnp.ones((n,), jnp.float32); beta = jnp.zeros((n,), jnp.float32)
        mean = jnp.zeros((n,), jnp.float32); var = jnp.ones((n,), jnp.float32)
        scale = gamma / jnp.sqrt(var + eps)
        return w * scale[None, :], b * scale[None, :] + (beta - mean * scale)[None, :]

    w1, b1 = fold_bn(w1, b1, 512)
    w2, b2 = fold_bn(w2, b2, 256)

    # Pad final Linear(64, 1) to 128 output lanes (lane-dense store); col 0 valid.
    w4p = jnp.zeros((64, 128), jnp.float32).at[:, 0].set(w4[:, 0])
    b4p = jnp.zeros((1, 128), jnp.float32).at[0, 0].set(b4[0, 0])

    bf = lambda a: a.astype(jnp.bfloat16)
    return (bf(w_stem), b_stem,
            bf(w1), b1, bf(w2), b2, bf(w3), b3, bf(w4p), b4p)


# ----------------------------------------------------------------------------
# Pure-JAX reference (same bf16 operand casts, f32 accumulation) for validation
# ----------------------------------------------------------------------------
def reference_forward(x_nchw, params):
    (w_stem, b_stem, w1, b1, w2, b2, w3, b3, w4, b4) = params
    B, C, H, W = x_nchw.shape
    x = jnp.transpose(x_nchw, (0, 2, 3, 1)).reshape(B, H * W, C)
    xb = x.astype(jnp.bfloat16).astype(jnp.float32)
    ws = w_stem.astype(jnp.float32)
    h = jnp.maximum(jnp.einsum("bsc,cf->bsf", xb, ws) + b_stem[None], 0.0)
    feat = jnp.mean(h, axis=1)                                 # (B, F)

    leaky = lambda v: jnp.where(v > 0, v, 0.1 * v)

    def lin(v, w, b):
        return jnp.dot(v.astype(jnp.bfloat16).astype(jnp.float32),
                       w.astype(jnp.float32)) + b

    hh = leaky(lin(feat, w1, b1))
    hh = leaky(lin(hh, w2, b2))
    hh = leaky(lin(hh, w3, b3))
    y = lin(hh, w4, b4)                                        # (B, 128)
    return y[:, :1]


if __name__ == "__main__":
    key = jax.random.PRNGKey(0)
    k_x, k_p = jax.random.split(key)

    B, C, H, W = 2, 4, 16, 16
    x = jax.random.normal(k_x, (B, C, H, W), jnp.float32)
    params = build_params(k_p, feat_dim=FEAT_DIM, in_ch=C)

    # spatial_tile=128 -> 2 spatial grid steps, exercising the pooled accumulator.
    out = glaucomanet_forward(x, params, spatial_tile=128)
    out = jax.block_until_ready(out)

    ref = reference_forward(x, params)
    assert out.shape == (B, 1), out.shape
    max_err = float(jnp.max(jnp.abs(out - ref)))
    assert jnp.allclose(out, ref, atol=2e-2, rtol=2e-2), (out, ref, max_err)

    print("KERNEL_OK")
</pallas_src>

<mosaic_0001>
module attributes {stable_mosaic.version = 11 : i64} {
  func.func @kernel(%arg0: i32, %arg1: i32, %arg2: memref<1x128x4xbf16, #tpu.memory_space<vmem>>, %arg3: memref<4x128xbf16, #tpu.memory_space<vmem>>, %arg4: memref<1x128xf32, #tpu.memory_space<vmem>>, %arg5: memref<128x512xbf16, #tpu.memory_space<vmem>>, %arg6: memref<1x512xf32, #tpu.memory_space<vmem>>, %arg7: memref<512x256xbf16, #tpu.memory_space<vmem>>, %arg8: memref<1x256xf32, #tpu.memory_space<vmem>>, %arg9: memref<256x64xbf16, #tpu.memory_space<vmem>>, %arg10: memref<1x64xf32, #tpu.memory_space<vmem>>, %arg11: memref<64x128xbf16, #tpu.memory_space<vmem>>, %arg12: memref<1x128xf32, #tpu.memory_space<vmem>>, %arg13: memref<1x1x128xf32, #tpu.memory_space<vmem>>, %arg14: memref<1x128xf32, #tpu.memory_space<vmem>>) attributes {dimension_semantics = [#tpu.dimension_semantics<parallel>, #tpu.dimension_semantics<arbitrary>], iteration_bounds = array<i64: 2, 2>, scalar_prefetch = 0 : i64, scratch_operands = 1 : i64, tpu.core_type = #tpu.core_type<tc>, window_params = [{transform_indices = @transform_0, window_bounds = array<i64: 1, 128, 4>}, {pipeline_mode = #tpu.pipeline_mode<synchronous>, transform_indices = @transform_1, window_bounds = array<i64: 4, 128>}, {pipeline_mode = #tpu.pipeline_mode<synchronous>, transform_indices = @transform_2, window_bounds = array<i64: 1, 128>}, {pipeline_mode = #tpu.pipeline_mode<synchronous>, transform_indices = @transform_3, window_bounds = array<i64: 128, 512>}, {pipeline_mode = #tpu.pipeline_mode<synchronous>, transform_indices = @transform_4, window_bounds = array<i64: 1, 512>}, {pipeline_mode = #tpu.pipeline_mode<synchronous>, transform_indices = @transform_5, window_bounds = array<i64: 512, 256>}, {pipeline_mode = #tpu.pipeline_mode<synchronous>, transform_indices = @transform_6, window_bounds = array<i64: 1, 256>}, {pipeline_mode = #tpu.pipeline_mode<synchronous>, transform_indices = @transform_7, window_bounds = array<i64: 256, 64>}, {pipeline_mode = #tpu.pipeline_mode<synchronous>, transform_indices = @transform_8, window_bounds = array<i64: 1, 64>}, {pipeline_mode = #tpu.pipeline_mode<synchronous>, transform_indices = @transform_9, window_bounds = array<i64: 64, 128>}, {pipeline_mode = #tpu.pipeline_mode<synchronous>, transform_indices = @transform_10, window_bounds = array<i64: 1, 128>}, {transform_indices = @transform_11, window_bounds = array<i64: 1, 1, 128>}]} {
    %c0_i32 = arith.constant 0 : i32
    %0 = arith.cmpi eq, %arg1, %c0_i32 : i32
    %1 = arith.extui %0 : i1 to i32
    %c0_i32_0 = arith.constant 0 : i32
    %2 = arith.cmpi ne, %1, %c0_i32_0 : i32
    scf.if %2 {
      %cst_13 = arith.constant 0.000000e+00 : f32
      %44 = vector.broadcast %cst_13 : f32 to vector<1x128xf32>
      %c0_14 = arith.constant 0 : index
      %c0_15 = arith.constant 0 : index
      %45 = vector.load %arg14[%c0_14, %c0_15] : memref<1x128xf32, #tpu.memory_space<vmem>>, vector<1x128xf32>
      tpu.vector_store %arg14[%c0_14, %c0_15], %44 {strides = array<i32>} : memref<1x128xf32, #tpu.memory_space<vmem>>, vector<1x128xf32>,
    } else {
    }
    %c0 = arith.constant 0 : index
    %c0_1 = arith.constant 0 : index
    %c0_2 = arith.constant 0 : index
    %3 = vector.load %arg2[%c0, %c0_1, %c0_2] : memref<1x128x4xbf16, #tpu.memory_space<vmem>>, vector<1x128x4xbf16>
    %4 = vector.shape_cast %3 : vector<1x128x4xbf16> to vector<128x4xbf16>
    %5 = arith.extf %4 : vector<128x4xbf16> to vector<128x4xf32>
    %c0_3 = arith.constant 0 : index
    %c0_4 = arith.constant 0 : index
    %6 = vector.load %arg3[%c0_3, %c0_4] : memref<4x128xbf16, #tpu.memory_space<vmem>>, vector<4x128xbf16>
    %7 = arith.extf %6 : vector<4x128xbf16> to vector<4x128xf32>
    %8 = vector.extract_strided_slice %5 {offsets = [0, 0], sizes = [128, 1], strides = [1, 1]} : vector<128x4xf32> to vector<128x1xf32>
    %9 = vector.extract_strided_slice %7 {offsets = [0, 0], sizes = [1, 128], strides = [1, 1]} : vector<4x128xf32> to vector<1x128xf32>
    %10 = vector.broadcast %8 : vector<128x1xf32> to vector<128x128xf32>
    %11 = vector.broadcast %9 : vector<1x128xf32> to vector<128x128xf32>
    %12 = arith.mulf %10, %11 : vector<128x128xf32>
    %13 = vector.extract_strided_slice %5 {offsets = [0, 1], sizes = [128, 1], strides = [1, 1]} : vector<128x4xf32> to vector<128x1xf32>
    %14 = vector.extract_strided_slice %7 {offsets = [1, 0], sizes = [1, 128], strides = [1, 1]} : vector<4x128xf32> to vector<1x128xf32>
    %15 = vector.broadcast %13 : vector<128x1xf32> to vector<128x128xf32>
    %16 = vector.broadcast %14 : vector<1x128xf32> to vector<128x128xf32>
    %17 = arith.mulf %15, %16 : vector<128x128xf32>
    %18 = arith.addf %12, %17 : vector<128x128xf32>
    %19 = vector.extract_strided_slice %5 {offsets = [0, 2], sizes = [128, 1], strides = [1, 1]} : vector<128x4xf32> to vector<128x1xf32>
    %20 = vector.extract_strided_slice %7 {offsets = [2, 0], sizes = [1, 128], strides = [1, 1]} : vector<4x128xf32> to vector<1x128xf32>
    %21 = vector.broadcast %19 : vector<128x1xf32> to vector<128x128xf32>
    %22 = vector.broadcast %20 : vector<1x128xf32> to vector<128x128xf32>
    %23 = arith.mulf %21, %22 : vector<128x128xf32>
    %24 = arith.addf %18, %23 : vector<128x128xf32>
    %25 = vector.extract_strided_slice %5 {offsets = [0, 3], sizes = [128, 1], strides = [1, 1]} : vector<128x4xf32> to vector<128x1xf32>
    %26 = vector.extract_strided_slice %7 {offsets = [3, 0], sizes = [1, 128], strides = [1, 1]} : vector<4x128xf32> to vector<1x128xf32>
    %27 = vector.broadcast %25 : vector<128x1xf32> to vector<128x128xf32>
    %28 = vector.broadcast %26 : vector<1x128xf32> to vector<128x128xf32>
    %29 = arith.mulf %27, %28 : vector<128x128xf32>
    %30 = arith.addf %24, %29 : vector<128x128xf32>
    %c0_5 = arith.constant 0 : index
    %c0_6 = arith.constant 0 : index
    %31 = vector.load %arg4[%c0_5, %c0_6] : memref<1x128xf32, #tpu.memory_space<vmem>>, vector<1x128xf32>
    %32 = vector.broadcast %31 : vector<1x128xf32> to vector<128x128xf32>
    %33 = arith.addf %30, %32 : vector<128x128xf32>
    %cst = arith.constant 0.000000e+00 : f32
    %34 = vector.broadcast %cst : f32 to vector<128x128xf32>
    %35 = arith.maximumf %33, %34 : vector<128x128xf32>
    %c0_7 = arith.constant 0 : index
    %c0_8 = arith.constant 0 : index
    %36 = vector.load %arg14[%c0_7, %c0_8] : memref<1x128xf32, #tpu.memory_space<vmem>>, vector<1x128xf32>
    %cst_9 = arith.constant dense<0.000000e+00> : vector<128xf32>
    %37 = vector.multi_reduction <add>, %35, %cst_9 [0] : vector<128x128xf32> to vector<128xf32>
    %38 = vector.shape_cast %37 : vector<128xf32> to vector<1x128xf32>
    %39 = arith.addf %36, %38 : vector<1x128xf32>
    %c0_10 = arith.constant 0 : index
    %c0_11 = arith.constant 0 : index
    %40 = vector.load %arg14[%c0_10, %c0_11] : memref<1x128xf32, #tpu.memory_space<vmem>>, vector<1x128xf32>
    tpu.vector_store %arg14[%c0_10, %c0_11], %39 {strides = array<i32>} : memref<1x128xf32, #tpu.memory_space<vmem>>, vector<1x128xf32>,
    %c1_i32 = arith.constant 1 : i32
    %41 = arith.cmpi eq, %arg1, %c1_i32 : i32
    %42 = arith.extui %41 : i1 to i32
    %c0_i32_12 = arith.constant 0 : i32
    %43 = arith.cmpi ne, %42, %c0_i32_12 : i32
    scf.if %43 {
      %c0_13 = arith.constant 0 : index
      %c0_14 = arith.constant 0 : index
      %44 = vector.load %arg14[%c0_13, %c0_14] : memref<1x128xf32, #tpu.memory_space<vmem>>, vector<1x128xf32>
      %cst_15 = arith.constant 3.906250e-03 : f32
      %45 = vector.broadcast %cst_15 : f32 to vector<1x128xf32>
      %46 = arith.mulf %44, %45 : vector<1x128xf32>
      %47 = arith.truncf %46 : vector<1x128xf32> to vector<1x128xbf16>
      %c0_16 = arith.constant 0 : index
      %c0_17 = arith.constant 0 : index
      %48 = vector.load %arg5[%c0_16, %c0_17] : memref<128x512xbf16, #tpu.memory_space<vmem>>, vector<128x512xbf16>
      %cst_18 = arith.constant dense<0.000000e+00> : vector<1x512xf32>
      %49 = tpu.matmul %47, %48, %cst_18 {dimension_numbers = #tpu.dot_dimension_numbers<[1], [0], [0], [1], [0, 0, 1, 1], [], []>} : vector<1x128xbf16>, vector<128x512xbf16>, vector<1x512xf32> -> vector<1x512xf32>
      %c0_19 = arith.constant 0 : index
      %c0_20 = arith.constant 0 : index
      %50 = vector.load %arg6[%c0_19, %c0_20] : memref<1x512xf32, #tpu.memory_space<vmem>>, vector<1x512xf32>
      %51 = arith.addf %49, %50 : vector<1x512xf32>
      %cst_21 = arith.constant 0.000000e+00 : f32
      %52 = vector.broadcast %cst_21 : f32 to vector<1x512xf32>
      %53 = arith.cmpf ogt, %51, %52 : vector<1x512xf32>
      %cst_22 = arith.constant 1.000000e-01 : f32
      %54 = vector.broadcast %cst_22 : f32 to vector<1x512xf32>
      %55 = arith.mulf %54, %51 : vector<1x512xf32>
      %56 = arith.select %53, %51, %55 : vector<1x512xi1>, vector<1x512xf32>
      %57 = arith.truncf %56 : vector<1x512xf32> to vector<1x512xbf16>
      %c0_23 = arith.constant 0 : index
      %c0_24 = arith.constant 0 : index
      %58 = vector.load %arg7[%c0_23, %c0_24] : memref<512x256xbf16, #tpu.memory_space<vmem>>, vector<512x256xbf16>
      %cst_25 = arith.constant dense<0.000000e+00> : vector<1x256xf32>
      %59 = tpu.matmul %57, %58, %cst_25 {dimension_numbers = #tpu.dot_dimension_numbers<[1], [0], [0], [1], [0, 0, 1, 1], [], []>} : vector<1x512xbf16>, vector<512x256xbf16>, vector<1x256xf32> -> vector<1x256xf32>
      %c0_26 = arith.constant 0 : index
      %c0_27 = arith.constant 0 : index
      %60 = vector.load %arg8[%c0_26, %c0_27] : memref<1x256xf32, #tpu.memory_space<vmem>>, vector<1x256xf32>
      %61 = arith.addf %59, %60 : vector<1x256xf32>
      %cst_28 = arith.constant 0.000000e+00 : f32
      %62 = vector.broadcast %cst_28 : f32 to vector<1x256xf32>
      %63 = arith.cmpf ogt, %61, %62 : vector<1x256xf32>
      %cst_29 = arith.constant 1.000000e-01 : f32
      %64 = vector.broadcast %cst_29 : f32 to vector<1x256xf32>
      %65 = arith.mulf %64, %61 : vector<1x256xf32>
      %66 = arith.select %63, %61, %65 : vector<1x256xi1>, vector<1x256xf32>
      %67 = arith.truncf %66 : vector<1x256xf32> to vector<1x256xbf16>
      %c0_30 = arith.constant 0 : index
      %c0_31 = arith.constant 0 : index
      %68 = vector.load %arg9[%c0_30, %c0_31] : memref<256x64xbf16, #tpu.memory_space<vmem>>, vector<256x64xbf16>
      %cst_32 = arith.constant dense<0.000000e+00> : vector<1x64xf32>
      %69 = tpu.matmul %67, %68, %cst_32 {dimension_numbers = #tpu.dot_dimension_numbers<[1], [0], [0], [1], [0, 0, 1, 1], [], []>} : vector<1x256xbf16>, vector<256x64xbf16>, vector<1x64xf32> -> vector<1x64xf32>
      %c0_33 = arith.constant 0 : index
      %c0_34 = arith.constant 0 : index
      %70 = vector.load %arg10[%c0_33, %c0_34] : memref<1x64xf32, #tpu.memory_space<vmem>>, vector<1x64xf32>
      %71 = arith.addf %69, %70 : vector<1x64xf32>
      %cst_35 = arith.constant 0.000000e+00 : f32
      %72 = vector.broadcast %cst_35 : f32 to vector<1x64xf32>
      %73 = arith.cmpf ogt, %71, %72 : vector<1x64xf32>
      %cst_36 = arith.constant 1.000000e-01 : f32
      %74 = vector.broadcast %cst_36 : f32 to vector<1x64xf32>
      %75 = arith.mulf %74, %71 : vector<1x64xf32>
      %76 = arith.select %73, %71, %75 : vector<1x64xi1>, vector<1x64xf32>
      %77 = arith.truncf %76 : vector<1x64xf32> to vector<1x64xbf16>
      %c0_37 = arith.constant 0 : index
      %c0_38 = arith.constant 0 : index
      %78 = vector.load %arg11[%c0_37, %c0_38] : memref<64x128xbf16, #tpu.memory_space<vmem>>, vector<64x128xbf16>
      %cst_39 = arith.constant dense<0.000000e+00> : vector<1x128xf32>
      %79 = tpu.matmul %77, %78, %cst_39 {dimension_numbers = #tpu.dot_dimension_numbers<[1], [0], [0], [1], [0, 0, 1, 1], [], []>} : vector<1x64xbf16>, vector<64x128xbf16>, vector<1x128xf32> -> vector<1x128xf32>
      %c0_40 = arith.constant 0 : index
      %c0_41 = arith.constant 0 : index
      %80 = vector.load %arg12[%c0_40, %c0_41] : memref<1x128xf32, #tpu.memory_space<vmem>>, vector<1x128xf32>
      %81 = arith.addf %79, %80 : vector<1x128xf32>
      %c0_42 = arith.constant 0 : index
      %c0_43 = arith.constant 0 : index
      %c0_44 = arith.constant 0 : index
      %82 = vector.load %arg13[%c0_42, %c0_43, %c0_44] : memref<1x1x128xf32, #tpu.memory_space<vmem>>, vector<1x1x128xf32>
      %83 = vector.shape_cast %82 : vector<1x1x128xf32> to vector<1x128xf32>
      %84 = vector.shape_cast %81 : vector<1x128xf32> to vector<1x1x128xf32>
      tpu.vector_store %arg13[%c0_42, %c0_43, %c0_44], %84 {strides = array<i32>} : memref<1x1x128xf32, #tpu.memory_space<vmem>>, vector<1x1x128xf32>,
    } else {
    }
    return
  }
  func.func @transform_0(%arg0: i32, %arg1: i32) -> (i32, i32, i32) {
    %c0_i32 = arith.constant 0 : i32
    %c0_i32_0 = arith.constant 0 : i32
    return %arg0, %arg1, %c0_i32 : i32, i32, i32
  }
  func.func @transform_1(%arg0: i32, %arg1: i32) -> (i32, i32) {
    %c0_i32 = arith.constant 0 : i32
    %c0_i32_0 = arith.constant 0 : i32
    %c0_i32_1 = arith.constant 0 : i32
    return %c0_i32, %c0_i32_0 : i32, i32
  }
  func.func @transform_2(%arg0: i32, %arg1: i32) -> (i32, i32) {
    %c0_i32 = arith.constant 0 : i32
    %c0_i32_0 = arith.constant 0 : i32
    %c0_i32_1 = arith.constant 0 : i32
    return %c0_i32, %c0_i32_0 : i32, i32
  }
  func.func @transform_3(%arg0: i32, %arg1: i32) -> (i32, i32) {
    %c0_i32 = arith.constant 0 : i32
    %c0_i32_0 = arith.constant 0 : i32
    %c0_i32_1 = arith.constant 0 : i32
    return %c0_i32, %c0_i32_0 : i32, i32
  }
  func.func @transform_4(%arg0: i32, %arg1: i32) -> (i32, i32) {
    %c0_i32 = arith.constant 0 : i32
    %c0_i32_0 = arith.constant 0 : i32
    %c0_i32_1 = arith.constant 0 : i32
    return %c0_i32, %c0_i32_0 : i32, i32
  }
  func.func @transform_5(%arg0: i32, %arg1: i32) -> (i32, i32) {
    %c0_i32 = arith.constant 0 : i32
    %c0_i32_0 = arith.constant 0 : i32
    %c0_i32_1 = arith.constant 0 : i32
    return %c0_i32, %c0_i32_0 : i32, i32
  }
  func.func @transform_6(%arg0: i32, %arg1: i32) -> (i32, i32) {
    %c0_i32 = arith.constant 0 : i32
    %c0_i32_0 = arith.constant 0 : i32
    %c0_i32_1 = arith.constant 0 : i32
    return %c0_i32, %c0_i32_0 : i32, i32
  }
  func.func @transform_7(%arg0: i32, %arg1: i32) -> (i32, i32) {
    %c0_i32 = arith.constant 0 : i32
    %c0_i32_0 = arith.constant 0 : i32
    %c0_i32_1 = arith.constant 0 : i32
    return %c0_i32, %c0_i32_0 : i32, i32
  }
  func.func @transform_8(%arg0: i32, %arg1: i32) -> (i32, i32) {
    %c0_i32 = arith.constant 0 : i32
    %c0_i32_0 = arith.constant 0 : i32
    %c0_i32_1 = arith.constant 0 : i32
    return %c0_i32, %c0_i32_0 : i32, i32
  }
  func.func @transform_9(%arg0: i32, %arg1: i32) -> (i32, i32) {
    %c0_i32 = arith.constant 0 : i32
    %c0_i32_0 = arith.constant 0 : i32
    %c0_i32_1 = arith.constant 0 : i32
    return %c0_i32, %c0_i32_0 : i32, i32
  }
  func.func @transform_10(%arg0: i32, %arg1: i32) -> (i32, i32) {
    %c0_i32 = arith.constant 0 : i32
    %c0_i32_0 = arith.constant 0 : i32
    %c0_i32_1 = arith.constant 0 : i32
    return %c0_i32, %c0_i32_0 : i32, i32
  }
  func.func @transform_11(%arg0: i32, %arg1: i32) -> (i32, i32, i32) {
    %c0_i32 = arith.constant 0 : i32
    %c0_i32_0 = arith.constant 0 : i32
    %c0_i32_1 = arith.constant 0 : i32
    return %arg0, %c0_i32, %c0_i32_0 : i32, i32, i32
  }
}

</mosaic_0001>

<bundles_post_ra>
// kernel: tpu_custom_call.1
= control target key start
LH: loop header
LB: loop body
LE: loop exit
PB: predicated region body
PF: predicated region fallthrough
CT: control target
= control target key end

     0   :  { %16 = vsyncpa [#allocation4], 0  ;;  %s3420_s0 = inlined_call_operand.vmem [shape: bf16[2,256,4], index: 0, kind: input, shape index: {}]   ;;  %s3421_s1 = inlined_call_operand.vmem [shape: bf16[4,128], index: 1, kind: input, shape index: {}]   ;;  %s3422_s2 = inlined_call_operand.vmem [shape: f32[1,128], index: 2, kind: input, shape index: {}]   ;;  %s3423_s3 = inlined_call_operand.vmem [shape: bf16[128,512], index: 3, kind: input, shape index: {}]   ;;  %s3424_s4 = inlined_call_operand.vmem [shape: f32[1,512], index: 4, kind: input, shape index: {}]   ;;  %s3425_s5 = inlined_call_operand.hbm [shape: bf16[512,256], index: 5, kind: input, shape index: {}]   ;;  %s3426_s6 = inlined_call_operand.vmem [shape: f32[1,256], index: 6, kind: input, shape index: {}]   ;;  %s3427_s7 = inlined_call_operand.vmem [shape: bf16[256,64], index: 7, kind: input, shape index: {}]   ;;  %s3428_s8 = inlined_call_operand.vmem [shape: f32[1,64], index: 8, kind: input, shape index: {}]   ;;  %s3429_s9 = inlined_call_operand.vmem [shape: bf16[64,128], index: 9, kind: input, shape index: {}]   ;;  %s3430_s10 = inlined_call_operand.vmem [shape: f32[1,128], index: 10, kind: input, shape index: {}]   ;;  %s3431_s11 = inlined_call_operand.hbm [shape: f32[2,1,128], index: 11, kind: output, shape index: {}]  }
   0x1   :  { %17 = vsyncpa [#allocation5], 0 }
   0x2   :  { %19 = vsyncpa [#allocation5 + $0x1], 0  ;;  %s2919_s17 = smov 0   ;;  %s2921_s18 = smov 0  }
   0x3   :  { %s2923_s19 = smov 0   ;;  %s2925_s20 = smov 0  }
   0x4   :  { %s2927_s21 = smov 0   ;;  %s2929_s22 = smov 0  }
   0x5   :  { %s2931_s23 = smov 0   ;;  %s2933_s24 = smov 0  }
   0x6 LB: > { %3440 = sst [smem:[#allocation9_spill]] %s2837_s22  ;;  %s2083_s25 = sadd.s32 4294967295, %s2845_s24   ;;  %s2845_s24 = sphi %s2933_s24, %s25_s24   ;;  %s2841_s23 = sphi %s2931_s23, %s3460_s23   ;;  %s2837_s22 = sphi %s2929_s22, %s3459_s22   ;;  %s2833_s21 = sphi %s2927_s21, %s3458_s21   ;;  %s2829_s20 = sphi %s2925_s20, %s3457_s20   ;;  %s2825_s19 = sphi %s2923_s19, %s3463_s19   ;;  %s2821_s18 = sphi %s2921_s18, %s3462_s18   ;;  %s2817_s17 = sphi %s2919_s17, %s3461_s17  }
   0x7   : > { %3441 = sst [smem:[#allocation10_spill]] %s2841_s23  ;;  %s2084_s26 = sadd.s32 4294967294, %s2845_s24  }
   0x8   : > { %s34_s27 = sadd.s32 1, %s2837_s22  ;;  %s37_s28 = sadd.s32 1, %s2841_s23 }
   0x9   : > { %p35_p0 = scmp.ge.s32.totalorder %s34_s27, 2  ;;  %s282_s29 = sadd.s32 1, %s2825_s19 }
   0xa   : > { %p292_p1 = scmp.ne.s32.totalorder %s2825_s19, %s2821_s18  ;;  %p293_p2 = scmp.eq.s32.totalorder %s2083_s25, 3 }
   0xb   : > { %s3465_s27 = smov (%p35_p0, %s34_s27), 0  ;;  %s3467_s28 = smov (!%p35_p0, %s37_s28), %s2841_s23 }
   0xc   : > { %3442 = sst [smem:[#allocation11_spill]] %s3465_s27  ;;  %p2969_p3 = por %p293_p2, %p292_p1 }
   0xd   : > { %p298_p4 = scmp.ne.s32.totalorder %s2821_s18, %s2817_s17  ;;  %p39_p5 = scmp.ge.s32.totalorder %s3467_s28, 2 }
   0xe   : > { %s3443_s30 = scalar_select %p2969_p3, 1, 0 }
   0xf   : > { %p299_p6 = scmp.eq.s32.totalorder %s2084_s26, 3  ;;  %p2085_p7 = scmp.ge.s32.totalorder %s2845_s24, 1 }
  0x10   : > { %p306_p8 = scmp.lt.s32.totalorder %s2845_s24, 5  ;;  %s3469_s28 = smov (%p39_p5, %s3467_s28), 0 }
  0x11   : > { %3444 = sst [smem:[#allocation12_spill]] %s3469_s28  ;;  %p2979_p9 = por %p299_p6, %p298_p4 }
  0x12   : > { %p2983_p10 = pnand %p2085_p7, %p306_p8  ;;  %s279_s14 = ssub.s32 %s2841_s23, %s3469_s28 }
  0x13   : > { %s3445_s12 = scalar_select %p2979_p9, 1, 0 }
  0x14   : > { %s3447_s13 = scalar_select %p2983_p10, 1, 0 }
  0x15   : > { %3446 = sst [smem:[#allocation13_spill]] %s3445_s12  ;;  %p280_p11 = scmp.eq.s32.totalorder %s279_s14, 0 }
  0x16   : > { %p2306_p12 = pneg %p2983_p10  ;;  %p2991_p13 = scmp.eq.s32.totalorder %s2083_s25, 0 }
  0x17   : > { %s2996_s16 = scalar_select %p280_p11, %s2825_s19, %s282_s29  }
  0x18   : > { %s3448_s15 = scalar_select %p2991_p13, 1, 0 }
  0x19   : > { %3449 = sst [smem:[#allocation14_spill]] %s2996_s16  ;;  %s2847_s26 = smov [#allocation3]  }
  0x1a   : > { %s330_s27 = sshll.u32 %s2847_s26, 4  ;;  %p3000_p0 = pnand %p2991_p13, %p2306_p12  ;;  %s331_s27 = int_to_ptr.vmem [resolvable:$true] %s330_s27 }
  0x1b   : > { %s2719_s23 = scalar_lea.hbm %s3425_s5, 8192 }
  0x1c   : > { %p2720_p1 = scmp.ne.s32.totalorder %s3425_s5, %s2719_s23  ;;  %p2721_p2 = pneg %p3000_p0 }
  0x1d   : > { %p2726_p6 = scmp.lt.u32.totalorder %s2719_s23, %s3425_s5 }
  0x1e   : > { %p2722_p4 = pnand %p2721_p2, %p2720_p1 }
  0x20   : > { %p2723_p5 = pneg %p2722_p4 }
  0x22   : > { %p2728_p7 = pnand %p2726_p6, %p2723_p5 }
  0x24   : > { %2731 = shalt.err (!%p2728_p7)
}
  0x25   : > { %s2732_s16 = scalar_lea.vmem %s331_s27, 8192  ;;  %p2740_p9 = scmp.lt.s32.totalorder %s331_s27, %s331_s27 }
  0x26   : > { %p2733_p8 = scmp.ne.s32.totalorder %s331_s27, %s2732_s16  ;;  %p2741_p3 = scmp.lt.s32.totalorder %s2732_s16, %s2732_s16 }
  0x28   : > { %p2735_p11 = pnand %p2733_p8, %p2721_p2  ;;  %p2742_p13 = por %p2741_p3, %p2740_p9 }
  0x2a   : > { %p2736_p12 = pneg %p2735_p11 }
  0x2c   : > { %p2743_p10 = pnand %p2742_p13, %p2736_p12 }
  0x2e   : > { %2746 = shalt.err (!%p2743_p10)
}
  0x2f   : > { %s2848_s28 = smov 128   ;;  %s2849_s12 = smov 8  }
  0x30   : > { %2309 = dma.hbm_to_vmem [thread:$0]  (!%p3000_p0), %s3425_s5, 8192, %s331_s27, [#allocation4], %s2848_s28, %s2848_s28, %s2849_s12  }
  0x31   : > { %p3451_p1 = scmp.ne.s32.totalorder %s3447_s13, 0 }
  0x32   : > { %p3452_p4 = scmp.ne.s32.totalorder (!%p3451_p1), %s3448_s15, 0 }
  0x33   : > { %374 = sbr.rel (%p3451_p1) target bundleno = 1281 (0x501), region = 64 }
  0x3a   : > { %2808 = dma.done.wait (%p3452_p4), [#allocation4], 8192  }
  0x3b   : > { %2810 = vsyncadd (%p3452_p4), [#allocation4], 4294959104  ;;  %s415_s23 = sand.u32 1, %s2821_s18   ;;  %s2090_s22 = sshll.u32 %s2829_s20, 4 }
  0x3c   : > { %p418_p3 = scmp.lt.s32.totalorder %s2833_s21, 1  ;;  %p420_p9 = scmp.lt.s32.totalorder %s2090_s22, 31 }
  0x3d   : > { %s3037_s15 = scalar_lea.vmem [#allocation6], %s415_s23  ;;  %p2093_p10 = scmp.ne.s32.totalorder %s2829_s20, 0 }
  0x3e   : > { %s419_s16 = scalar_select %p418_p3, %s2833_s21, 1 }
  0x3f   : > { %s3471_s22 = smov (!%p420_p9, %s2090_s22), 31  ;;  %431 = sbr.rel (%p2093_p10) target bundleno = 70 (0x46), region = 72 }
  0x40   : > { %s2091_s27 = sshll.u32 %s419_s16, 5  ;;  %v2850_v0 = vmov (!%p2093_p10), 0.0  }
  0x41   : > { %s423_s13 = sadd.s32 %s2091_s27, %s3471_s22  ;;  %432 = vst [vmem:[#allocation2] sm:$0x1] (!%p2093_p10), %v2850_v0 }
  0x42   : > { %s2092_s29 = sshll.u32 %s423_s13, 2 }
  0x43   : > { %s3033_s12 = scalar_lea.vmem %s3420_s0, %s2092_s29 }
  0x46 PF: > { %v2249_v1 = vld [vmem:[%s3033_s12 + $0x10] sm:$0xff]   ;;  %v2217_v2 = vld [vmem:[%s3033_s12] sm:$0xff]   ;;  %v2250_v3 = vld [vmem:[%s3033_s12 + $0x18] sm:$0xff]   ;;  %v2851_v4 = vmov 0   ;;  %v2852_v34 = vmov 1   ;;  %v2853_v35 = vmov 2   ;;  %v547_v41 = vlaneseq }
  0x47   : > { %2403 = vset.pattern.permute.xlu1 %v2851_v4  ;;  %2392 = vset.pattern.permute.xlu0 %v2851_v4  ;;  %v2226_v5 = vunpack.c.l.bf16 %v2249_v1  ;;  %v2227_v6 = vunpack.c.h.bf16 %v2249_v1  ;;  %v2218_v7 = vunpack.c.l.bf16 %v2217_v2  ;;  %v2219_v8 = vunpack.c.h.bf16 %v2217_v2  ;;  %v2248_v9 = vld [vmem:[%s3033_s12 + $0x8] sm:$0xff]   ;;  %v2251_v15 = vld [vmem:[%s3033_s12 + $0x20] sm:$0xff]   ;;  %v2254_v24 = vld [vmem:[%s3033_s12 + $0x38] sm:$0xff]   ;;  %p2095_p13 = scmp.ne.s32.totalorder %s2829_s20, 1 }
  0x48   : > { %v2252_v10 = vld [vmem:[%s3033_s12 + $0x28] sm:$0xff]   ;;  %v2230_v11 = vunpack.c.l.bf16 %v2250_v3  ;;  %v2231_v12 = vunpack.c.h.bf16 %v2250_v3  ;;  %v2222_v13 = vunpack.c.l.bf16 %v2248_v9  ;;  %v2223_v14 = vunpack.c.h.bf16 %v2248_v9  ;;  %v2253_v25 = vld [vmem:[%s3033_s12 + $0x30] sm:$0xff]   ;;  %v465_v45 = vld [vmem:[%s3421_s1] sm:$0x3] }
  0x49   : > { %v2404_v16 = vpack.i.bf16 %v2227_v6, %v2226_v5  ;;  %v2393_v17 = vpack.i.bf16 %v2219_v8, %v2218_v7  ;;  %v2238_v18 = vunpack.c.l.bf16 %v2252_v10  ;;  %v2239_v19 = vunpack.c.h.bf16 %v2252_v10 }
  0x4a   : > { %v2409_v20 = vpack.i.bf16 %v2231_v12, %v2230_v11  ;;  %v2398_v21 = vpack.i.bf16 %v2223_v14, %v2222_v13  ;;  %v2234_v22 = vunpack.c.l.bf16 %v2251_v15  ;;  %v2235_v23 = vunpack.c.h.bf16 %v2251_v15 }
  0x4b   : > { %2405 = vperm.xlu1 %2403, %v2404_v16   ;;  %2394 = vperm.xlu0 %2392, %v2393_v17   ;;  %v2419_v26 = vpack.i.bf16 %v2239_v19, %v2238_v18  ;;  %v2246_v27 = vunpack.c.l.bf16 %v2254_v24  ;;  %v2247_v29 = vunpack.c.h.bf16 %v2254_v24  ;;  %v2242_v30 = vunpack.c.l.bf16 %v2253_v25 }
  0x4c   : > { %v2414_v28 = vpack.i.bf16 %v2235_v23, %v2234_v22  ;;  %v2243_v31 = vunpack.c.h.bf16 %v2253_v25  ;;  %v2854_v36 = vmov 3   ;;  %v3048_v44 = vshrl.u32 %v547_v41, 7 }
  0x4d   : > { %v2429_v32 = vpack.i.bf16 %v2247_v29, %v2246_v27  ;;  %v466_v48 = vunpack.c.l.bf16 %v465_v45  ;;  %vm2857_vm6 = vmmov (!%p2095_p13), 0   ;;  %vm1941_vm8 = vcmask (!%p2095_p13), 523264  }
  0x4e   : > { %v2424_v33 = vpack.i.bf16 %v2243_v31, %v2242_v30  ;;  %v3054_v49 = vsub.s32 0, %v3048_v44  ;;  %v3057_v50 = vsub.s32 1, %v3048_v44  ;;  %v733_v51 = vsub.s32 2, %v3048_v44 }
  0x4f   : > { %2410 = vperm.xlu1 %2403, %v2409_v20   ;;  %2399 = vperm.xlu0 %2392, %v2398_v21   ;;  %v833_v52 = vsub.s32 3, %v3048_v44  ;;  %v2711_v44 = vld [vmem:[%s3427_s7 + $0x70] sm:$0xff] (!%p2095_p13)  }
  0x50   : > { %v550_v53 = vrot.slane %v466_v48, %v3054_v49  ;;  %v3063_v62 = vrot.slane %v466_v48, %v3057_v50  ;;  %v3067_v63 = vrot.slane %v466_v48, %v733_v51 }
  0x51   : > { %v3071_v0 = vrot.slane %v466_v48, %v833_v52 }
  0x53   : > { %2420 = vperm.xlu1 %2403, %v2419_v26   ;;  %2415 = vperm.xlu0 %2392, %v2414_v28  }
  0x57   : > { %2430 = vperm.xlu1 %2403, %v2429_v32   ;;  %2425 = vperm.xlu0 %2392, %v2424_v33  }
  0x5b   : > { %2440 = vset.pattern.permute.xlu1 %v2852_v34  ;;  %2434 = vset.pattern.permute.xlu0 %v2852_v34 }
  0x5c   : > { %2442 = vperm.xlu1 %2440, %v2398_v21   ;;  %2436 = vperm.xlu0 %2434, %v2393_v17  }
  0x60   : > { %2447 = vperm.xlu1 %2440, %v2404_v16   ;;  %2452 = vperm.xlu0 %2434, %v2409_v20  }
  0x64   : > { %2457 = vperm.xlu1 %2440, %v2414_v28   ;;  %2462 = vperm.xlu0 %2434, %v2419_v26  }
  0x68   : > { %2467 = vperm.xlu1 %2440, %v2424_v33   ;;  %2472 = vperm.xlu0 %2434, %v2429_v32  }
  0x6c   : > { %2476 = vset.pattern.permute.xlu1 %v2853_v35  ;;  %2482 = vset.pattern.permute.xlu0 %v2853_v35 }
  0x6d   : > { %2478 = vperm.xlu1 %2476, %v2393_v17   ;;  %2484 = vperm.xlu0 %2482, %v2398_v21  }
  0x71   : > { %2488 = vset.pattern.permute.xlu1 %v2854_v36  ;;  %2500 = vperm.xlu0 %2482, %v2404_v16  }
  0x72   : > { %2490 = vperm.xlu1 %2488, %v2393_v17  }
  0x75   : > { %2510 = vperm.xlu0 %2482, %v2409_v20  }
  0x76   : > { %2495 = vperm.xlu1 %2488, %v2398_v21  }
  0x79   : > { %2520 = vperm.xlu0 %2482, %v2414_v28  }
  0x7a   : > { %2505 = vperm.xlu1 %2488, %v2404_v16  }
  0x7d   : > { %2530 = vperm.xlu0 %2482, %v2419_v26  }
  0x7e   : > { %2515 = vperm.xlu1 %2488, %v2409_v20  }
  0x81   : > { %2540 = vperm.xlu0 %2482, %v2424_v33  }
  0x82   : > { %2525 = vperm.xlu1 %2488, %v2414_v28  }
  0x85   : > { %2550 = vperm.xlu0 %2482, %v2429_v32  }
  0x86   : > { %2535 = vperm.xlu1 %2488, %v2419_v26  }
  0x89   : > { %2554 = vset.pattern.permute.xlu0 %v2854_v36 }
  0x8a   : > { %2545 = vperm.xlu1 %2488, %v2424_v33   ;;  %828 = vperm.xlu0 %2554, %v2247_v29  }
  0x8e   : > { %824 = vperm.xlu1 %2488, %v2246_v27  }
  0xca   : > { %v2406_v37 = vpop.permute.xlu1 %2405  ;;  %v2395_v38 = vpop.permute.xlu0 %2394 }
  0xcb   : > { %v2408_v54 = vunpack.i.h.bf16 %v2406_v37  ;;  %v2407_v55 = vunpack.i.l.bf16 %v2406_v37  ;;  %v2397_v58 = vunpack.i.h.bf16 %v2395_v38  ;;  %v2396_v59 = vunpack.i.l.bf16 %v2395_v38 }
  0xcd   : > { %v556_v1 = vmul.f32 %v2408_v54, %v550_v53  ;;  %v555_v2 = vmul.f32 %v2407_v55, %v550_v53  ;;  %v552_v7 = vmul.f32 %v2397_v58, %v550_v53  ;;  %v551_v8 = vmul.f32 %v2396_v59, %v550_v53 }
  0xce   : > { %v2411_v39 = vpop.permute.xlu1 %2410  ;;  %v2400_v40 = vpop.permute.xlu0 %2399 }
  0xcf   : > { %v2413_v60 = vunpack.i.h.bf16 %v2411_v39  ;;  %v2412_v61 = vunpack.i.l.bf16 %v2411_v39  ;;  %v2402_v3 = vunpack.i.h.bf16 %v2400_v40  ;;  %v2401_v4 = vunpack.i.l.bf16 %v2400_v40 }
  0xd1   : > { %v3073_v9 = vmul.f32 %v2413_v60, %v550_v53  ;;  %v3075_v10 = vmul.f32 %v2412_v61, %v550_v53  ;;  %v554_v19 = vmul.f32 %v2402_v3, %v550_v53  ;;  %v553_v20 = vmul.f32 %v2401_v4, %v550_v53 }
  0xd2   : > { %v2421_v42 = vpop.permute.xlu1 %2420  ;;  %v2416_v43 = vpop.permute.xlu0 %2415 }
  0xd3   : > { %v2423_v11 = vunpack.i.h.bf16 %v2421_v42  ;;  %v2422_v12 = vunpack.i.l.bf16 %v2421_v42  ;;  %v2418_v13 = vunpack.i.h.bf16 %v2416_v43  ;;  %v2417_v14 = vunpack.i.l.bf16 %v2416_v43 }
  0xd5   : > { %v562_v29 = vmul.f32 %v2423_v11, %v550_v53  ;;  %v561_v30 = vmul.f32 %v2422_v12, %v550_v53  ;;  %v560_v31 = vmul.f32 %v2418_v13, %v550_v53  ;;  %v559_v32 = vmul.f32 %v2417_v14, %v550_v53 }
  0xd6   : > { %v2431_v46 = vpop.permute.xlu1 %2430  ;;  %v2426_v47 = vpop.permute.xlu0 %2425 }
  0xd7   : > { %v2433_v15 = vunpack.i.h.bf16 %v2431_v46  ;;  %v2432_v16 = vunpack.i.l.bf16 %v2431_v46  ;;  %v2428_v25 = vunpack.i.h.bf16 %v2426_v47  ;;  %v2427_v26 = vunpack.i.l.bf16 %v2426_v47 }
  0xd9   : > { %v566_v33 = vmul.f32 %v2433_v15, %v550_v53  ;;  %v565_v34 = vmul.f32 %v2432_v16, %v550_v53  ;;  %v564_v43 = vmul.f32 %v2428_v25, %v550_v53  ;;  %v563_v45 = vmul.f32 %v2427_v26, %v550_v53 }
  0xdb   : > { %v2443_v56 = vpop.permute.xlu1 %2442  ;;  %v2437_v57 = vpop.permute.xlu0 %2436 }
  0xdc   : > { %v2445_v17 = vunpack.i.h.bf16 %v2443_v56  ;;  %v2444_v18 = vunpack.i.l.bf16 %v2443_v56  ;;  %v2439_v21 = vunpack.i.h.bf16 %v2437_v57  ;;  %v2438_v22 = vunpack.i.l.bf16 %v2437_v57 }
  0xde   : > { %v638_v35 = vmul.f32 %v2445_v17, %v3063_v62  ;;  %v637_v36 = vmul.f32 %v2444_v18, %v3063_v62  ;;  %v636_v37 = vmul.f32 %v2439_v21, %v3063_v62  ;;  %v635_v38 = vmul.f32 %v2438_v22, %v3063_v62 }
  0xdf   : > { %v2448_v5 = vpop.permute.xlu1 %2447  ;;  %v2453_v6 = vpop.permute.xlu0 %2452 }
  0xe0   : > { %v2450_v27 = vunpack.i.h.bf16 %v2448_v5  ;;  %v2449_v28 = vunpack.i.l.bf16 %v2448_v5  ;;  %v2455_v39 = vunpack.i.h.bf16 %v2453_v6  ;;  %v2454_v40 = vunpack.i.l.bf16 %v2453_v6 }
  0xe1   : > { %v653_v57 = vadd.f32 %v637_v36, %v553_v20  ;;  %v654_v58 = vadd.f32 %v638_v35, %v554_v19  ;;  %v651_v61 = vadd.f32 %v635_v38, %v551_v8  ;;  %v652_v3 = vadd.f32 %v636_v37, %v552_v7 }
  0xe2   : > { %v640_v46 = vmul.f32 %v2450_v27, %v3063_v62  ;;  %v639_v47 = vmul.f32 %v2449_v28, %v3063_v62  ;;  %v642_v4 = vmul.f32 %v2455_v39, %v3063_v62  ;;  %v641_v5 = vmul.f32 %v2454_v40, %v3063_v62 }
  0xe3   : > { %v2458_v23 = vpop.permute.xlu1 %2457  ;;  %v2463_v24 = vpop.permute.xlu0 %2462 }
  0xe4   : > { %v2460_v48 = vunpack.i.h.bf16 %v2458_v23  ;;  %v2459_v54 = vunpack.i.l.bf16 %v2458_v23  ;;  %v2465_v55 = vunpack.i.h.bf16 %v2463_v24  ;;  %v2464_v56 = vunpack.i.l.bf16 %v2463_v24 }
  0xe5   : > { %v3085_v6 = vadd.f32 %v640_v46, %v556_v1  ;;  %v3087_v53 = vadd.f32 %v639_v47, %v555_v2  ;;  %v3096_v2 = vadd.f32 %v642_v4, %v3073_v9  ;;  %v657_v20 = vadd.f32 %v641_v5, %v3075_v10 }
  0xe6   : > { %v644_v15 = vmul.f32 %v2460_v48, %v3063_v62  ;;  %v643_v16 = vmul.f32 %v2459_v54, %v3063_v62  ;;  %v646_v17 = vmul.f32 %v2465_v55, %v3063_v62  ;;  %v645_v7 = vmul.f32 %v2464_v56, %v3063_v62  ;;  %v3126_v56 = vld [vmem:[%s3422_s2] ss:$0 sm:$0xff] }
  0xe7   : > { %v2468_v41 = vpop.permute.xlu1 %2467  ;;  %v2473_v42 = vpop.permute.xlu0 %2472 }
  0xe8   : > { %v2470_v59 = vunpack.i.h.bf16 %v2468_v41  ;;  %v2469_v60 = vunpack.i.l.bf16 %v2468_v41  ;;  %v2475_v11 = vunpack.i.h.bf16 %v2473_v42  ;;  %v2474_v12 = vunpack.i.l.bf16 %v2473_v42 }
  0xe9   : > { %v659_v28 = vadd.f32 %v643_v16, %v559_v32  ;;  %v3103_v35 = vadd.f32 %v644_v15, %v560_v31  ;;  %v3105_v38 = vadd.f32 %v646_v17, %v562_v29  ;;  %v3107_v10 = vadd.f32 %v645_v7, %v561_v30 }
  0xea   : > { %v648_v8 = vmul.f32 %v2470_v59, %v3063_v62  ;;  %v647_v18 = vmul.f32 %v2469_v60, %v3063_v62  ;;  %v650_v23 = vmul.f32 %v2475_v11, %v3063_v62  ;;  %v649_v24 = vmul.f32 %v2474_v12, %v3063_v62 }
  0xec   : > { %v2479_v13 = vpop.permute.xlu1 %2478  ;;  %v2485_v14 = vpop.permute.xlu0 %2484  ;;  %v3109_v39 = vadd.f32 %v647_v18, %v563_v45  ;;  %v3111_v40 = vadd.f32 %v648_v8, %v564_v43  ;;  %v3115_v32 = vadd.f32 %v650_v23, %v566_v33  ;;  %v3117_v31 = vadd.f32 %v649_v24, %v565_v34 }
  0xed   : > { %v2481_v1 = vunpack.i.h.bf16 %v2479_v13  ;;  %v2480_v19 = vunpack.i.l.bf16 %v2479_v13  ;;  %v2487_v21 = vunpack.i.h.bf16 %v2485_v14  ;;  %v2486_v22 = vunpack.i.l.bf16 %v2485_v14 }
  0xef   : > { %v736_v25 = vmul.f32 %v2481_v1, %v3067_v63  ;;  %v735_v26 = vmul.f32 %v2480_v19, %v3067_v63  ;;  %v738_v62 = vmul.f32 %v2487_v21, %v3067_v63  ;;  %v737_v41 = vmul.f32 %v2486_v22, %v3067_v63 }
  0xf0   : > { %v2501_v27 = vpop.permute.xlu0 %2500 }
  0xf1   : > { %v2503_v36 = vunpack.i.h.bf16 %v2501_v27  ;;  %v2502_v37 = vunpack.i.l.bf16 %v2501_v27  ;;  %v2491_v9 = vpop.permute.xlu1 %2490  ;;  %v751_v47 = vadd.f32 %v735_v26, %v651_v61  ;;  %v752_v48 = vadd.f32 %v736_v25, %v652_v3 }
  0xf2   : > { %v2493_v42 = vunpack.i.h.bf16 %v2491_v9  ;;  %v2492_v46 = vunpack.i.l.bf16 %v2491_v9  ;;  %v753_v61 = vadd.f32 %v737_v41, %v653_v57  ;;  %v754_v3 = vadd.f32 %v738_v62, %v654_v58 }
  0xf3   : > { %v740_v30 = vmul.f32 %v2503_v36, %v3067_v63  ;;  %v739_v45 = vmul.f32 %v2502_v37, %v3067_v63 }
  0xf4   : > { %v2511_v29 = vpop.permute.xlu0 %2510  ;;  %v836_v43 = vmul.f32 %v2493_v42, %v3071_v0  ;;  %v835_v54 = vmul.f32 %v2492_v46, %v3071_v0 }
  0xf5   : > { %v2496_v55 = vpop.permute.xlu1 %2495  ;;  %v2513_v33 = vunpack.i.h.bf16 %v2511_v29  ;;  %v2512_v34 = vunpack.i.l.bf16 %v2511_v29  ;;  %v756_v57 = vadd.f32 %v740_v30, %v3085_v6  ;;  %v755_v58 = vadd.f32 %v739_v45, %v3087_v53 }
  0xf6   : > { %v2498_v59 = vunpack.i.h.bf16 %v2496_v55  ;;  %v2497_v60 = vunpack.i.l.bf16 %v2496_v55  ;;  %v851_v4 = vadd.f32 %v835_v54, %v751_v47  ;;  %v852_v5 = vadd.f32 %v836_v43, %v752_v48 }
  0xf7   : > { %v742_v11 = vmul.f32 %v2513_v33, %v3067_v63  ;;  %v741_v12 = vmul.f32 %v2512_v34, %v3067_v63 }
  0xf8   : > { %v838_v13 = vmul.f32 %v2498_v59, %v3071_v0  ;;  %v837_v14 = vmul.f32 %v2497_v60, %v3071_v0  ;;  %v2521_v15 = vpop.permute.xlu0 %2520  ;;  %v874_v16 = vadd.f32 %v3126_v56, %v851_v4  ;;  %v875_v17 = vadd.f32 %v3126_v56, %v852_v5 }
  0xf9   : > { %v2523_v7 = vunpack.i.h.bf16 %v2521_v15  ;;  %v2522_v8 = vunpack.i.l.bf16 %v2521_v15  ;;  %v2506_v18 = vpop.permute.xlu1 %2505  ;;  %v757_v23 = vadd.f32 %v741_v12, %v657_v20  ;;  %v758_v62 = vadd.f32 %v742_v11, %v3096_v2 }
  0xfa   : > { %v853_v1 = vadd.f32 %v837_v14, %v753_v61  ;;  %v854_v19 = vadd.f32 %v838_v13, %v754_v3  ;;  %v890_v21 = vmax.f32 %v874_v16, 0.0  ;;  %v891_v22 = vmax.f32 %v875_v17, 0.0 }
  0xfb   : > { %v743_v24 = vmul.f32 %v2522_v8, %v3067_v63  ;;  %v2508_v27 = vunpack.i.h.bf16 %v2506_v18  ;;  %v2507_v36 = vunpack.i.l.bf16 %v2506_v18  ;;  %v744_v6 = vmul.f32 %v2523_v7, %v3067_v63 }
  0xfc   : > { %v876_v25 = vadd.f32 %v3126_v56, %v853_v1  ;;  %v877_v26 = vadd.f32 %v3126_v56, %v854_v19  ;;  %v2531_v37 = vpop.permute.xlu0 %2530  ;;  %v907_v9 = vadd.f32 %v891_v22, %v890_v21 }
  0xfd   : > { %v2533_v53 = vunpack.i.h.bf16 %v2531_v37  ;;  %v2516_v41 = vpop.permute.xlu1 %2515  ;;  %v759_v46 = vadd.f32 %v743_v24, %v659_v28  ;;  %v840_v20 = vmul.f32 %v2508_v27, %v3071_v0  ;;  %v839_v47 = vmul.f32 %v2507_v36, %v3071_v0 }
  0xfe   : > { %v892_v42 = vmax.f32 %v876_v25, 0.0  ;;  %v2532_v29 = vunpack.i.l.bf16 %v2531_v37  ;;  %v2518_v30 = vunpack.i.h.bf16 %v2516_v41  ;;  %v2517_v45 = vunpack.i.l.bf16 %v2516_v41 }
  0xff   : > { %v746_v48 = vmul.f32 %v2533_v53, %v3067_v63  ;;  %v893_v43 = vmax.f32 %v877_v26, 0.0  ;;  %v855_v55 = vadd.f32 %v839_v47, %v755_v58  ;;  %v856_v33 = vadd.f32 %v840_v20, %v756_v57 }
 0x100   : > { %v908_v54 = vadd.f32 %v907_v9, %v892_v42  ;;  %v2541_v2 = vpop.permute.xlu0 %2540  ;;  %v760_v34 = vadd.f32 %v744_v6, %v3103_v35  ;;  %v745_v59 = vmul.f32 %v2532_v29, %v3067_v63  ;;  %v842_v28 = vmul.f32 %v2518_v30, %v3071_v0 }
 0x101   : > { %v841_v60 = vmul.f32 %v2517_v45, %v3071_v0  ;;  %v2526_v61 = vpop.permute.xlu1 %2525  ;;  %v878_v4 = vadd.f32 %v3126_v56, %v855_v55  ;;  %v879_v5 = vadd.f32 %v3126_v56, %v856_v33  ;;  %v2543_v11 = vunpack.i.h.bf16 %v2541_v2 }
 0x102   : > { %v909_v3 = vadd.f32 %v908_v54, %v893_v43  ;;  %v762_v12 = vadd.f32 %v746_v48, %v3105_v38  ;;  %v858_v14 = vadd.f32 %v842_v28, %v758_v62  ;;  %v2542_v15 = vunpack.i.l.bf16 %v2541_v2 }
 0x103   : > { %v857_v13 = vadd.f32 %v841_v60, %v757_v23  ;;  %v894_v16 = vmax.f32 %v878_v4, 0.0  ;;  %v761_v35 = vadd.f32 %v745_v59, %v3107_v10  ;;  %v748_v17 = vmul.f32 %v2543_v11, %v3067_v63 }
 0x104   : > { %v2528_v7 = vunpack.i.h.bf16 %v2526_v61  ;;  %v2551_v8 = vpop.permute.xlu0 %2550  ;;  %v881_v57 = vadd.f32 %v3126_v56, %v858_v14  ;;  %v747_v58 = vmul.f32 %v2542_v15, %v3067_v63  ;;  %v2527_v1 = vunpack.i.l.bf16 %v2526_v61 }
 0x105   : > { %v880_v18 = vadd.f32 %v3126_v56, %v857_v13  ;;  %v2536_v19 = vpop.permute.xlu1 %2535  ;;  %v895_v21 = vmax.f32 %v879_v5, 0.0  ;;  %v910_v38 = vadd.f32 %v909_v3, %v894_v16  ;;  %v2553_v23 = vunpack.i.h.bf16 %v2551_v8 }
 0x106   : > { %v844_v22 = vmul.f32 %v2528_v7, %v3071_v0  ;;  %v897_v25 = vmax.f32 %v881_v57, 0.0  ;;  %v764_v10 = vadd.f32 %v748_v17, %v3111_v40  ;;  %v843_v26 = vmul.f32 %v2527_v1, %v3071_v0 }
 0x107   : > { %v896_v24 = vmax.f32 %v880_v18, 0.0  ;;  %v911_v27 = vadd.f32 %v910_v38, %v895_v21  ;;  %v750_v37 = vmul.f32 %v2553_v23, %v3067_v63  ;;  %v2552_v9 = vunpack.i.l.bf16 %v2551_v8 }
 0x108   : > { %v860_v36 = vadd.f32 %v844_v22, %v760_v34  ;;  %v763_v62 = vadd.f32 %v747_v58, %v3109_v39  ;;  %v859_v6 = vadd.f32 %v843_v26, %v759_v46  ;;  %v2538_v53 = vunpack.i.h.bf16 %v2536_v19 }
 0x109   : > { %v2537_v41 = vunpack.i.l.bf16 %v2536_v19  ;;  %v2546_v42 = vpop.permute.xlu1 %2545  ;;  %v912_v20 = vadd.f32 %v911_v27, %v896_v24  ;;  %v749_v48 = vmul.f32 %v2552_v9, %v3067_v63  ;;  %v829_v54 = vpop.permute.xlu0 %828  ;;  %v766_v33 = vadd.f32 %v750_v37, %v3115_v32 }
 0x10a   : > { %v883_v47 = vadd.f32 %v3126_v56, %v860_v36  ;;  %v2548_v29 = vunpack.i.h.bf16 %v2546_v42  ;;  %v882_v40 = vadd.f32 %v3126_v56, %v859_v6  ;;  %v846_v30 = vmul.f32 %v2538_v53, %v3071_v0  ;;  %v906_v36 = vld [vmem:[#allocation2] sm:$0x1]  ;;  %v2558_v53 = vld [vmem:[%s3423_s3 + $0x24] ss:$16 sps:$4 sm:$0xff] (!%p2095_p13)  }
 0x10b   : > { %v845_v45 = vmul.f32 %v2537_v41, %v3071_v0  ;;  %v2547_v43 = vunpack.i.l.bf16 %v2546_v42  ;;  %v913_v55 = vadd.f32 %v912_v20, %v897_v25  ;;  %v850_v61 = vmul.f32 %v3071_v0, %v829_v54  ;;  %v2560_v41 = vld [vmem:[%s3423_s3 + $0x20] ss:$16 sps:$4 sm:$0xff] (!%p2095_p13)   ;;  %v2561_v42 = vld [vmem:[%s3423_s3 + $0x44] ss:$16 sps:$4 sm:$0xff] (!%p2095_p13)  }
 0x10c   : > { %v899_v39 = vmax.f32 %v883_v47, 0.0  ;;  %v848_v46 = vmul.f32 %v2548_v29, %v3071_v0  ;;  %v898_v2 = vmax.f32 %v882_v40, 0.0  ;;  %v862_v59 = vadd.f32 %v846_v30, %v762_v12  ;;  %v2563_v20 = vld [vmem:[%s3423_s3 + $0x40] ss:$16 sps:$4 sm:$0xff] (!%p2095_p13)   ;;  %v2564_v47 = vld [vmem:[%s3423_s3 + $0x64] ss:$16 sps:$4 sm:$0xff] (!%p2095_p13)  }
 0x10d   : > { %v861_v34 = vadd.f32 %v845_v45, %v761_v35  ;;  %v847_v63 = vmul.f32 %v2547_v43, %v3071_v0  ;;  %v825_v28 = vpop.permute.xlu1 %824  ;;  %v765_v3 = vadd.f32 %v749_v48, %v3117_v31  ;;  %v866_v18 = vadd.f32 %v850_v61, %v766_v33  ;;  %v2566_v48 = vld [vmem:[%s3423_s3 + $0x60] ss:$16 sps:$4 sm:$0xff] (!%p2095_p13)   ;;  %v2567_v29 = vld [vmem:[%s3423_s3 + $0x84] ss:$16 sps:$4 sm:$0xff] (!%p2095_p13)  }
 0x10e   : > { %v864_v60 = vadd.f32 %v848_v46, %v764_v10  ;;  %v849_v4 = vmul.f32 %v3071_v0, %v825_v28  ;;  %v914_v5 = vadd.f32 %v913_v55, %v898_v2  ;;  %v885_v13 = vadd.f32 %v3126_v56, %v862_v59  ;;  %v2569_v40 = vld [vmem:[%s3423_s3 + $0x80] ss:$16 sps:$4 sm:$0xff] (!%p2095_p13)   ;;  %v2570_v30 = vld [vmem:[%s3423_s3 + $0xa4] ss:$16 sps:$4 sm:$0xff] (!%p2095_p13)  }
 0x10f   : > { %v884_v11 = vadd.f32 %v3126_v56, %v861_v34  ;;  %v863_v14 = vadd.f32 %v847_v63, %v763_v62  ;;  %v889_v1 = vadd.f32 %v3126_v56, %v866_v18  ;;  %v2557_v62 = vld [vmem:[%s3423_s3] ss:$16 sps:$4 sm:$0xff] (!%p2095_p13)   ;;  %v2855_v6 = vmov (!%p2095_p13), 0   ;;  %v2573_v43 = vld [vmem:[%s3423_s3 + $0xc4] ss:$16 sps:$4 sm:$0xff] (!%p2095_p13)  }
 0x110   : > { %v915_v32 = vadd.f32 %v914_v5, %v899_v39  ;;  %v865_v16 = vadd.f32 %v849_v4, %v765_v3  ;;  %v887_v35 = vadd.f32 %v3126_v56, %v864_v60  ;;  %v901_v17 = vmax.f32 %v885_v13, 0.0  ;;  %1183 = vmatprep.mubr.bf16.mxu1 (!%p2095_p13), %v2855_v6  ;;  %v2572_v45 = vld [vmem:[%s3423_s3 + $0xa0] ss:$16 sps:$4 sm:$0xff] (!%p2095_p13)   ;;  %v2576_v2 = vld [vmem:[%s3423_s3 + $0xe4] ss:$16 sps:$4 sm:$0xff] (!%p2095_p13)  }
 0x111   : > { %v900_v15 = vmax.f32 %v884_v11, 0.0  ;;  %v886_v12 = vadd.f32 %v3126_v56, %v863_v14  ;;  %v905_v38 = vmax.f32 %v889_v1, 0.0  ;;  %v2575_v54 = vld [vmem:[%s3423_s3 + $0xc0] ss:$16 sps:$4 sm:$0xff] (!%p2095_p13)   ;;  %v2581_v60 = vld [vmem:[%s3423_s3 + $0xc] ss:$16 sps:$4 sm:$0xff] (!%p2095_p13)  }
 0x112   : > { %v888_v0 = vadd.f32 %v3126_v56, %v865_v16  ;;  %v903_v57 = vmax.f32 %v887_v35, 0.0  ;;  %v2555_v56 = vld [vmem:[%s3423_s3 + $0x4] ss:$16 sps:$4 sm:$0xff] (!%p2095_p13)   ;;  %v2578_v28 = vld [vmem:[%s3423_s3 + $0xe0] ss:$16 sps:$4 sm:$0xff] (!%p2095_p13)  }
 0x113   : > { %v916_v7 = vadd.f32 %v915_v32, %v900_v15  ;;  %v902_v8 = vmax.f32 %v886_v12, 0.0  ;;  %1151 = vmatprep.subr.bf16.mxu1 (!%p2095_p13), %v2555_v56  ;;  %v2603_v39 = vld [vmem:[#allocation3 + $0x4] ss:$8 sps:$4 sm:$0xff] (!%p2095_p13)   ;;  %v2605_v46 = vld [vmem:[#allocation3] ss:$8 sps:$4 sm:$0xff] (!%p2095_p13)  }
 0x114   : > { %v904_v19 = vmax.f32 %v888_v0, 0.0  ;;  %1152 = vmatpush1.bf16.msra.mxu1 (!%p2095_p13), %v2557_v62  ;;  %v2606_v33 = vld [vmem:[#allocation3 + $0x14] ss:$8 sps:$4 sm:$0xff] (!%p2095_p13)   ;;  %1645 = vmatprep.subr.bf16.mxu0 (!%p2095_p13), %v2603_v39  ;;  %v2608_v34 = vld [vmem:[#allocation3 + $0x10] ss:$8 sps:$4 sm:$0xff] (!%p2095_p13)  }
 0x115   : > { %v917_v31 = vadd.f32 %v916_v7, %v901_v17  ;;  %1153 = vmatprep.subr.bf16.mxu1 (!%p2095_p13), %v2558_v53  ;;  %1646 = vmatpush1.bf16.msra.mxu0 (!%p2095_p13), %v2605_v46  ;;  %v2609_v63 = vld [vmem:[#allocation3 + $0x24] ss:$8 sps:$4 sm:$0xff] (!%p2095_p13)   ;;  %v2611_v61 = vld [vmem:[#allocation3 + $0x20] ss:$8 sps:$4 sm:$0xff] (!%p2095_p13)   ;;  %v2612_v4 = vld [vmem:[#allocation3 + $0x34] ss:$8 sps:$4 sm:$0xff] (!%p2095_p13)  }
 0x116   : > { %1647 = vmatprep.subr.bf16.mxu0 (!%p2095_p13), %v2606_v33  ;;  %v2579_v5 = vld [vmem:[%s3423_s3 + $0x8] ss:$16 sps:$4 sm:$0xff] (!%p2095_p13)   ;;  %v2584_v11 = vld [vmem:[%s3423_s3 + $0x2c] ss:$16 sps:$4 sm:$0xff] (!%p2095_p13)   ;;  %v2707_v33 = vld [vmem:[%s3427_s7 + $0x60] sm:$0xff] (!%p2095_p13)  }
 0x117   : > { %v918_v58 = vadd.f32 %v917_v31, %v902_v8  ;;  %v2614_v13 = vld [vmem:[#allocation3 + $0x30] ss:$8 sps:$4 sm:$0xff] (!%p2095_p13)   ;;  %v2615_v14 = vld [vmem:[#allocation3 + $0x44] ss:$8 sps:$4 sm:$0xff] (!%p2095_p13)   ;;  %v2617_v12 = vld [vmem:[#allocation3 + $0x40] ss:$8 sps:$4 sm:$0xff] (!%p2095_p13)  }
 0x118   : > { %1154 = vmatpush1.bf16.msra.mxu1 (!%p2095_p13), %v2560_v41  ;;  %v2582_v32 = vld [vmem:[%s3423_s3 + $0x28] ss:$16 sps:$4 sm:$0xff] (!%p2095_p13)   ;;  %v2587_v15 = vld [vmem:[%s3423_s3 + $0x4c] ss:$16 sps:$4 sm:$0xff] (!%p2095_p13)  }
 0x119   : > { %v919_v21 = vadd.f32 %v918_v58, %v903_v57  ;;  %1155 = vmatprep.subr.bf16.mxu1 (!%p2095_p13), %v2561_v42  ;;  %1648 = vmatpush1.bf16.msra.mxu0 (!%p2095_p13), %v2608_v34  ;;  %v2585_v16 = vld [vmem:[%s3423_s3 + $0x48] ss:$16 sps:$4 sm:$0xff] (!%p2095_p13)   ;;  %v2590_v17 = vld [vmem:[%s3423_s3 + $0x6c] ss:$16 sps:$4 sm:$0xff] (!%p2095_p13)  }
 0x11a   : > { %1649 = vmatprep.subr.bf16.mxu0 (!%p2095_p13), %v2609_v63  ;;  %v2618_v35 = vld [vmem:[#allocation3 + $0x54] ss:$8 sps:$4 sm:$0xff] (!%p2095_p13)   ;;  %v2620_v7 = vld [vmem:[#allocation3 + $0x50] ss:$8 sps:$4 sm:$0xff] (!%p2095_p13)   ;;  %v2621_v8 = vld [vmem:[#allocation3 + $0x64] ss:$8 sps:$4 sm:$0xff] (!%p2095_p13)  }
 0x11b   : > { %v920_v22 = vadd.f32 %v919_v21, %v904_v19  ;;  %v2588_v18 = vld [vmem:[%s3423_s3 + $0x68] ss:$16 sps:$4 sm:$0xff] (!%p2095_p13)   ;;  %v2593_v31 = vld [vmem:[%s3423_s3 + $0x8c] ss:$16 sps:$4 sm:$0xff] (!%p2095_p13)   ;;  %v3318_v63 = vld [vmem:[%s3424_s4] sm:$0xf] (!%p2095_p13) }
 0x11c   : > { %1156 = vmatpush1.bf16.msra.mxu1 (!%p2095_p13), %v2563_v20  ;;  %v2623_v0 = vld [vmem:[#allocation3 + $0x60] ss:$8 sps:$4 sm:$0xff] (!%p2095_p13)   ;;  %v2624_v57 = vld [vmem:[#allocation3 + $0x74] ss:$8 sps:$4 sm:$0xff] (!%p2095_p13)   ;;  %v2626_v19 = vld [vmem:[#allocation3 + $0x70] ss:$8 sps:$4 sm:$0xff] (!%p2095_p13)  }
 0x11d   : > { %v921_v23 = vadd.f32 %v920_v22, %v905_v38  ;;  %1157 = vmatprep.subr.bf16.mxu1 (!%p2095_p13), %v2564_v47  ;;  %1650 = vmatpush1.bf16.msra.mxu0 (!%p2095_p13), %v2611_v61  ;;  %v2591_v58 = vld [vmem:[%s3423_s3 + $0x88] ss:$16 sps:$4 sm:$0xff] (!%p2095_p13)   ;;  %v2596_v1 = vld [vmem:[%s3423_s3 + $0xac] ss:$16 sps:$4 sm:$0xff] (!%p2095_p13)  }
 0x11e   : > { %1651 = vmatprep.subr.bf16.mxu0 (!%p2095_p13), %v2612_v4  ;;  %v2627_v21 = vld [vmem:[#allocation3 + $0x84] ss:$8 sps:$4 sm:$0xff] (!%p2095_p13)   ;;  %v2638_v56 = vld [vmem:[#allocation3 + $0xb0] ss:$8 sps:$4 sm:$0xff] (!%p2095_p13)   ;;  %v2642_v53 = vld [vmem:[#allocation3 + $0xd4] ss:$8 sps:$4 sm:$0xff] (!%p2095_p13)  }
 0x11f   : > { %v922_v24 = vrot.slane %v921_v23, 4  ;;  %v2594_v38 = vld [vmem:[%s3423_s3 + $0xa8] ss:$16 sps:$4 sm:$0xff] (!%p2095_p13)   ;;  %v2599_v22 = vld [vmem:[%s3423_s3 + $0xcc] ss:$16 sps:$4 sm:$0xff] (!%p2095_p13)  }
 0x120   : > { %1158 = vmatpush1.bf16.msra.mxu1 (!%p2095_p13), %v2566_v48  ;;  %v2639_v62 = vld [vmem:[#allocation3 + $0xc4] ss:$8 sps:$4 sm:$0xff] (!%p2095_p13)   ;;  %v2644_v41 = vld [vmem:[#allocation3 + $0xd0] ss:$8 sps:$4 sm:$0xff] (!%p2095_p13)   ;;  %v2647_v20 = vld [vmem:[#allocation3 + $0xe0] ss:$8 sps:$4 sm:$0xff] (!%p2095_p13)  }
 0x121   : > { %v923_v25 = vadd.f32 %v922_v24, %v921_v23  ;;  %1159 = vmatprep.subr.bf16.mxu1 (!%p2095_p13), %v2567_v29  ;;  %1652 = vmatpush1.bf16.msra.mxu0 (!%p2095_p13), %v2614_v13  ;;  %v2629_v23 = vld [vmem:[#allocation3 + $0x80] ss:$8 sps:$4 sm:$0xff] (!%p2095_p13)   ;;  %v2630_v24 = vld [vmem:[#allocation3 + $0x94] ss:$8 sps:$4 sm:$0xff] (!%p2095_p13)   ;;  %v2645_v42 = vld [vmem:[#allocation3 + $0xe4] ss:$8 sps:$4 sm:$0xff] (!%p2095_p13)  }
 0x122   : > { %1653 = vmatprep.subr.bf16.mxu0 (!%p2095_p13), %v2615_v14  ;;  %v2648_v47 = vld [vmem:[#allocation3 + $0xf4] ss:$8 sps:$4 sm:$0xff] (!%p2095_p13)   ;;  %v2650_v48 = vld [vmem:[#allocation3 + $0xf0] ss:$8 sps:$4 sm:$0xff] (!%p2095_p13)   ;;  %v2653_v29 = vld [vmem:[#allocation3 + $0x104] ss:$8 sps:$4 sm:$0xff] (!%p2095_p13)  }
 0x123   : > { %v924_v10 = vrot.slane %v923_v25, 2  ;;  %v2705_v39 = vld [vmem:[%s3427_s7 + $0x58] sm:$0xff] (!%p2095_p13)   ;;  %v2709_v34 = vld [vmem:[%s3427_s7 + $0x68] sm:$0xff] (!%p2095_p13)  }
 0x124   : > { %1160 = vmatpush1.bf16.msra.mxu1 (!%p2095_p13), %v2569_v40  ;;  %v2699_v40 = vld [vmem:[%s3427_s7 + $0x40] sm:$0xff] (!%p2095_p13)   ;;  %v2706_v46 = vld [vmem:[%s3427_s7 + $0x18] sm:$0xff] (!%p2095_p13)  }
 0x125   : > { %v925_v26 = vadd.f32 %v924_v10, %v923_v25  ;;  %1161 = vmatprep.subr.bf16.mxu1 (!%p2095_p13), %v2570_v30  ;;  %1654 = vmatpush1.bf16.msra.mxu0 (!%p2095_p13), %v2617_v12  ;;  %v2597_v25 = vld [vmem:[%s3423_s3 + $0xc8] ss:$16 sps:$4 sm:$0xff] (!%p2095_p13)   ;;  %v2602_v10 = vld [vmem:[%s3423_s3 + $0xec] ss:$16 sps:$4 sm:$0xff] (!%p2095_p13)   ;;  %v2700_v30 = vld [vmem:[%s3427_s7] sm:$0xff] (!%p2095_p13)  }
 0x126   : > { %1655 = vmatprep.subr.bf16.mxu0 (!%p2095_p13), %v2618_v35  ;;  %v2651_v35 = vld [vmem:[#allocation3 + $0x100] ss:$8 sps:$4 sm:$0xff] (!%p2095_p13)  }
 0x127   : > { %v926_v27 = vrot.slane %v925_v26, 1  ;;  %933 = sbr.rel (%p2095_p13) target bundleno = 1256 (0x4e8), region = 76 }
 0x128   : > { %1162 = vmatpush1.bf16.msra.mxu1 (!%p2095_p13), %v2572_v45  ;;  %v2701_v45 = vld [vmem:[%s3427_s7 + $0x48] sm:$0xff] (!%p2095_p13)  }
 0x129   : > { %v927_v37 = vadd.f32 %v926_v27, %v925_v26  ;;  %1163 = vmatprep.subr.bf16.mxu1 (!%p2095_p13), %v2573_v43  ;;  %1656 = vmatpush1.bf16.msra.mxu0 (!%p2095_p13), %v2620_v7  ;;  %v2632_v26 = vld [vmem:[#allocation3 + $0x90] ss:$8 sps:$4 sm:$0xff] (!%p2095_p13)   ;;  %v2633_v27 = vld [vmem:[#allocation3 + $0xa4] ss:$8 sps:$4 sm:$0xff] (!%p2095_p13)   ;;  %v2656_v7 = vld [vmem:[#allocation3 + $0x114] ss:$8 sps:$4 sm:$0xff] (!%p2095_p13)  }
 0x12a   : > { %1657 = vmatprep.subr.bf16.mxu0 (!%p2095_p13), %v2621_v8  ;;  %v2702_v43 = vld [vmem:[%s3427_s7 + $0x8] sm:$0xff] (!%p2095_p13)   ;;  %v2654_v8 = vld [vmem:[#allocation3 + $0x110] ss:$8 sps:$4 sm:$0xff] (!%p2095_p13)  }
 0x12b   : > { %v928_v9 = vadd.f32 %v927_v37, %v906_v36  ;;  %v2600_v36 = vld [vmem:[%s3423_s3 + $0xe8] ss:$16 sps:$4 sm:$0xff] (!%p2095_p13)  }
 0x12c   : > { %1164 = vmatpush1.bf16.msra.mxu1 (!%p2095_p13), %v2575_v54  ;;  %v2635_v37 = vld [vmem:[#allocation3 + $0xa0] ss:$8 sps:$4 sm:$0xff] (!%p2095_p13)   ;;  %v2703_v54 = vld [vmem:[%s3427_s7 + $0x50] sm:$0xff] (!%p2095_p13)  }
 0x12d   : > { %929 = vst [vmem:[#allocation2] sm:$0x1] %v928_v9  ;;  %1165 = vmatprep.subr.bf16.mxu1 (!%p2095_p13), %v2576_v2  ;;  %1658 = vmatpush1.bf16.msra.mxu0 (!%p2095_p13), %v2623_v0  ;;  %v2636_v9 = vld [vmem:[#allocation3 + $0xb4] ss:$8 sps:$4 sm:$0xff] (!%p2095_p13)  }
 0x12e   : > { %1659 = vmatprep.subr.bf16.mxu0 %v2624_v57  ;;  %v2708_v2 = vld [vmem:[%s3427_s7 + $0x20] sm:$0xff]   ;;  %v2660_v57 = vld [vmem:[#allocation3 + $0x130] ss:$8 sps:$4 sm:$0xff]  }
 0x12f   : > { %v2662_v0 = vld [vmem:[#allocation3 + $0x134] ss:$8 sps:$4 sm:$0xff]  }
 0x130   : > { %1166 = vmatpush1.bf16.msra.mxu1 %v2578_v28  ;;  %v1134_v28 = vrot.slane %v3318_v63, %v3054_v49 }
 0x131   : > { %1192 = vmatprep.subr.bf16.mxu1 %v2581_v60  ;;  %1660 = vmatpush1.bf16.msra.mxu0 %v2626_v19  ;;  %v1138_v60 = vrot.slane %v3318_v63, %v3057_v50  ;;  %v2668_v19 = vld [vmem:[#allocation3 + $0x154] ss:$8 sps:$4 sm:$0xff]  }
 0x132   : > { %1661 = vmatprep.subr.bf16.mxu0 %v2627_v21  ;;  %v2666_v21 = vld [vmem:[#allocation3 + $0x150] ss:$8 sps:$4 sm:$0xff]  }
 0x134   : > { %v934_v55 = vld [vmem:[#allocation2] sm:$0x1] }
 0x135   : > { %v935_v59 = vmul.f32 0.00390625, %v934_v55  ;;  %1662 = vmatpush1.bf16.msra.mxu0 %v2629_v23  ;;  %v2704_v55 = vld [vmem:[%s3427_s7 + $0x10] sm:$0xff]   ;;  %v2669_v23 = vld [vmem:[#allocation3 + $0x160] ss:$8 sps:$4 sm:$0xff]  }
 0x136   : > { %1663 = vmatprep.subr.bf16.mxu0 %v2630_v24  ;;  %v2674_v24 = vld [vmem:[#allocation3 + $0x174] ss:$8 sps:$4 sm:$0xff]  }
 0x137   : > { %v3230_v3 = vpack.c.bf16 %v935_v59, %v935_v59  ;;  %v2710_v59 = vld [vmem:[%s3427_s7 + $0x28] sm:$0xff]  }
 0x139   : > { %1184 = vmatmul.mubr.bf16.vlgmr.msra.gmra.mrb[0].mxu1 %v3230_v3  ;;  %1664 = vmatpush1.bf16.msra.mxu0 %v2632_v26 }
 0x13a   : > { %1193 = vmatpush1.bf16.msra.mxu1 %v2579_v5  ;;  %1224 = vmatprep.mubr.bf16.mxu1 %v2855_v6  ;;  %v2641_v6 = vld [vmem:[#allocation3 + $0xc0] ss:$8 sps:$4 sm:$0xff]  }
 0x13b   : > { %1194 = vmatprep.subr.bf16.mxu1 %v2584_v11  ;;  %1665 = vmatprep.subr.bf16.mxu0 %v2633_v27 }
 0x13d   : > { %1666 = vmatpush1.bf16.msra.mxu0 %v2635_v37 }
 0x13e   : > { %1195 = vmatpush1.bf16.msra.mxu1 %v2582_v32  ;;  %1667 = vmatprep.subr.bf16.mxu0 %v2636_v9  ;;  %v2677_v9 = vld [vmem:[#allocation3 + $0x184] ss:$8 sps:$4 sm:$0xff]  }
 0x13f   : > { %1196 = vmatprep.subr.bf16.mxu1 %v2587_v15 }
 0x141   : > { %1668 = vmatpush1.bf16.msra.mxu0 %v2638_v56 }
 0x142   : > { %1197 = vmatpush1.bf16.msra.mxu1 %v2585_v16  ;;  %1669 = vmatprep.subr.bf16.mxu0 %v2639_v62 }
 0x143   : > { %1198 = vmatprep.subr.bf16.mxu1 %v2590_v17 }
 0x145   : > { %1670 = vmatpush1.bf16.msra.mxu0 %v2641_v6  ;;  %v2675_v6 = vld [vmem:[#allocation3 + $0x180] ss:$8 sps:$4 sm:$0xff]  }
 0x146   : > { %1199 = vmatpush1.bf16.msra.mxu1 %v2588_v18  ;;  %1671 = vmatprep.subr.bf16.mxu0 %v2642_v53  ;;  %v2659_v18 = vld [vmem:[#allocation3 + $0x124] ss:$8 sps:$4 sm:$0xff]  }
 0x147   : > { %1200 = vmatprep.subr.bf16.mxu1 %v2593_v31  ;;  %v2657_v31 = vld [vmem:[#allocation3 + $0x120] ss:$8 sps:$4 sm:$0xff]  }
 0x149   : > { %1672 = vmatpush1.bf16.msra.mxu0 %v2644_v41  ;;  %v2678_v41 = vld [vmem:[#allocation3 + $0x190] ss:$8 sps:$4 sm:$0xff]  }
 0x14a   : > { %1201 = vmatpush1.bf16.msra.mxu1 %v2591_v58  ;;  %1673 = vmatprep.subr.bf16.mxu0 %v2645_v42  ;;  %v2665_v58 = vld [vmem:[#allocation3 + $0x144] ss:$8 sps:$4 sm:$0xff]  }
 0x14b   : > { %1202 = vmatprep.subr.bf16.mxu1 %v2596_v1  ;;  %v2663_v1 = vld [vmem:[#allocation3 + $0x140] ss:$8 sps:$4 sm:$0xff]   ;;  %v2683_v42 = vld [vmem:[#allocation3 + $0x1a4] ss:$8 sps:$4 sm:$0xff]  }
 0x14d   : > { %1674 = vmatpush1.bf16.msra.mxu0 %v2647_v20  ;;  %v2681_v20 = vld [vmem:[#allocation3 + $0x1a0] ss:$8 sps:$4 sm:$0xff]  }
 0x14e   : > { %1203 = vmatpush1.bf16.msra.mxu1 %v2594_v38  ;;  %1675 = vmatprep.subr.bf16.mxu0 %v2648_v47  ;;  %v2671_v38 = vld [vmem:[#allocation3 + $0x164] ss:$8 sps:$4 sm:$0xff]   ;;  %v2686_v47 = vld [vmem:[#allocation3 + $0x1b4] ss:$8 sps:$4 sm:$0xff]  }
 0x14f   : > { %1204 = vmatprep.subr.bf16.mxu1 %v2599_v22  ;;  %v1146_v22 = vrot.slane %v3318_v63, %v833_v52  ;;  %v2680_v52 = vld [vmem:[#allocation3 + $0x194] ss:$8 sps:$4 sm:$0xff]  }
 0x151   : > { %1676 = vmatpush1.bf16.msra.mxu0 %v2650_v48  ;;  %v2684_v48 = vld [vmem:[#allocation3 + $0x1b0] ss:$8 sps:$4 sm:$0xff]  }
 0x152   : > { %1205 = vmatpush1.bf16.msra.mxu1 %v2597_v25  ;;  %1686 = vmatprep.subr.bf16.mxu0 %v2653_v29  ;;  %v2689_v29 = vld [vmem:[#allocation3 + $0x1c4] ss:$8 sps:$4 sm:$0xff]  }
 0x153   : > { %1206 = vmatprep.subr.bf16.mxu1 %v2602_v10 }
 0x156   : > { %1207 = vmatpush1.bf16.msra.mxu1 %v2600_v36  ;;  %v2672_v36 = vld [vmem:[#allocation3 + $0x170] ss:$8 sps:$4 sm:$0xff]  }
 0x157   : > { %2255 = vmatprep.subr.bf16.mxu1 %v2699_v40  ;;  %v2687_v40 = vld [vmem:[#allocation3 + $0x1c0] ss:$8 sps:$4 sm:$0xff]  }
 0x159   : > { %1225 = vmatmul.mubr.bf16.vlgmr.msra.gmra.mrb[4].mxu1 %v3230_v3 }
 0x15a   : > { %2256 = vmatpush3.bf16.msra.mxu1 %v2700_v30  ;;  %v2692_v30 = vld [vmem:[#allocation3 + $0x1d4] ss:$8 sps:$4 sm:$0xff]  }
 0x15b   : > { %2257 = vmatprep.subr.bf16.mxu1 %v2701_v45  ;;  %v1142_v45 = vrot.slane %v3318_v63, %v733_v51  ;;  %v2712_v51 = vld [vmem:[%s3427_s7 + $0x30] sm:$0xff]   ;;  %v2713_v63 = vld [vmem:[%s3427_s7 + $0x78] sm:$0xff]  }
 0x15e   : > { %2258 = vmatpush3.bf16.msra.mxu1 %v2702_v43  ;;  %v2690_v43 = vld [vmem:[#allocation3 + $0x1d0] ss:$8 sps:$4 sm:$0xff]  }
 0x15f   : > { %2259 = vmatprep.subr.bf16.mxu1 %v2703_v54  ;;  %v2695_v54 = vld [vmem:[#allocation3 + $0x1e4] ss:$8 sps:$4 sm:$0xff]  }
 0x162   : > { %2260 = vmatpush3.bf16.msra.mxu1 %v2704_v55 }
 0x163   : > { %2261 = vmatprep.subr.bf16.mxu1 %v2705_v39  ;;  %v2693_v39 = vld [vmem:[#allocation3 + $0x1e0] ss:$8 sps:$4 sm:$0xff]  }
 0x166   : > { %2262 = vmatpush3.bf16.msra.mxu1 %v2706_v46  ;;  %v2698_v46 = vld [vmem:[#allocation3 + $0x1f4] ss:$8 sps:$4 sm:$0xff]  }
 0x167   : > { %2263 = vmatprep.subr.bf16.mxu1 %v2707_v33 }
 0x16a   : > { %2264 = vmatpush3.bf16.msra.mxu1 %v2708_v2  ;;  %v2696_v2 = vld [vmem:[#allocation3 + $0x1f0] ss:$8 sps:$4 sm:$0xff]  }
 0x16b   : > { %2265 = vmatprep.subr.bf16.mxu1 %v2709_v34 }
 0x16e   : > { %2266 = vmatpush3.bf16.msra.mxu1 %v2710_v59 }
 0x16f   : > { %2267 = vmatprep.subr.bf16.mxu1 %v2711_v44 }
 0x172   : > { %2268 = vmatpush3.bf16.msra.mxu1 %v2712_v51 }
 0x173   : > { %2269 = vmatprep.subr.bf16.mxu1 %v2713_v63 }
 0x20c   : > { %v1185_v61 = vpop.f32.mrb[0].mxu1 }
 0x20d   : > { %v1186_v3 = vadd.f32 %v1185_v61, %v1134_v28  ;;  %v1187_v4 = vpop.f32.mrb[1].mxu1  ;;  %v2714_v28 = vld [vmem:[%s3427_s7 + $0x38] sm:$0xff]   ;;  %v1313_v61 = vld [vmem:[%s3426_s6] sm:$0x3] }
 0x20e   : > { %v1188_v5 = vadd.f32 %v1187_v4, %v1138_v60  ;;  %v1189_v11 = vpop.f32.mrb[2].mxu1  ;;  %2270 = vmatpush3.bf16.msra.mxu1 %v2714_v28  ;;  %v2856_v60 = vmov 0.0   ;;  %v1642_v4 = vrot.slane %v1313_v61, %v3057_v50  ;;  %v2716_v50 = vld [vmem:[%s3429_s9 + $0x8] sm:$0xff]  }
 0x20f   : > { %vm1233_vm0 = vcmp.gt.f32.partialorder %v1186_v3, 0.0  ;;  %v1237_v13 = vmul.f32 0.1, %v1186_v3  ;;  %v1190_v14 = vpop.f32.mrb[3].mxu1  ;;  %2282 = vmatprep.subr.bf16.mxu1 %v2856_v60 }
 0x210   : > { %vm1234_vm1 = vcmp.gt.f32.partialorder %v1188_v5, 0.0  ;;  %v1238_v32 = vmul.f32 0.1, %v1188_v5 }
 0x211   : > { %v1241_v15 = vsel %vm1233_vm0, %v1186_v3, %v1237_v13  ;;  %v1638_v3 = vrot.slane %v1313_v61, %v3054_v49 }
 0x212   : > { %v1242_v12 = vsel %vm1234_vm1, %v1188_v5, %v1238_v32  ;;  %v1245_v17 = vpack.c.bf16 %v1241_v15, %v1241_v15 }
 0x213   : > { %v1246_v16 = vpack.c.bf16 %v1242_v12, %v1242_v12 }
 0x215   : > { %1677 = vmatprep.mubr.bf16.mxu0 %v1246_v16 }
 0x216   : > { %1678 = vmatmul.mubr.bf16.vlgmr.msra.gmra.mrb[0].mxu0 %v1245_v17 }
 0x217   : > { %1687 = vmatpush1.bf16.msra.mxu0 %v2651_v35 }
 0x218   : > { %1688 = vmatprep.subr.bf16.mxu0 %v2656_v7 }
 0x21b   : > { %1689 = vmatpush1.bf16.msra.mxu0 %v2654_v8  ;;  %v2715_v8 = vld [vmem:[%s3429_s9] sm:$0xff]  }
 0x21c   : > { %1690 = vmatprep.subr.bf16.mxu0 %v2659_v18  ;;  %v2717_v18 = vld [vmem:[%s3429_s9 + $0x10] sm:$0xff]  }
 0x21f   : > { %1691 = vmatpush1.bf16.msra.mxu0 %v2657_v31  ;;  %v2718_v31 = vld [vmem:[%s3429_s9 + $0x18] sm:$0xff]  }
 0x220   : > { %1692 = vmatprep.subr.bf16.mxu0 %v2662_v0 }
 0x223   : > { %1693 = vmatpush1.bf16.msra.mxu0 %v2660_v57  ;;  %v1767_v57 = vld [vmem:[%s3428_s8] sm:$0x1] }
 0x224   : > { %1694 = vmatprep.subr.bf16.mxu0 %v2665_v58 }
 0x227   : > { %1695 = vmatpush1.bf16.msra.mxu0 %v2663_v1 }
 0x228   : > { %1696 = vmatprep.subr.bf16.mxu0 %v2668_v19 }
 0x22b   : > { %1697 = vmatpush1.bf16.msra.mxu0 %v2666_v21 }
 0x22c   : > { %1698 = vmatprep.subr.bf16.mxu0 %v2671_v38  ;;  %v1226_v25 = vpop.f32.mrb[4].mxu1 }
 0x22d   : > { %v1228_v10 = vpop.f32.mrb[5].mxu1  ;;  %v1227_v55 = vadd.f32 %v1226_v25, %v1142_v45  ;;  %v1916_v25 = vld [vmem:[%s3430_s10] sm:$0x1] }
 0x22e   : > { %v1229_v26 = vadd.f32 %v1228_v10, %v1146_v22  ;;  %v1230_v27 = vpop.f32.mrb[6].mxu1 }
 0x22f   : > { %1699 = vmatpush1.bf16.msra.mxu0 %v2669_v23  ;;  %v1231_v37 = vpop.f32.mrb[7].mxu1  ;;  %v1239_v33 = vmul.f32 0.1, %v1227_v55  ;;  %vm1235_vm3 = vcmp.gt.f32.partialorder %v1227_v55, 0.0 }
 0x230   : > { %1700 = vmatprep.subr.bf16.mxu0 %v2674_v24  ;;  %vm1236_vm2 = vcmp.gt.f32.partialorder %v1229_v26, 0.0  ;;  %v1240_v56 = vmul.f32 0.1, %v1229_v26 }
 0x231   : > { %v1243_v34 = vsel %vm1235_vm3, %v1227_v55, %v1239_v33 }
 0x232   : > { %v1244_v62 = vsel %vm1236_vm2, %v1229_v26, %v1240_v56  ;;  %v1247_v59 = vpack.c.bf16 %v1243_v34, %v1243_v34 }
 0x233   : > { %1701 = vmatpush1.bf16.msra.mxu0 %v2672_v36  ;;  %v1248_v53 = vpack.c.bf16 %v1244_v62, %v1244_v62 }
 0x234   : > { %1702 = vmatprep.subr.bf16.mxu0 %v2677_v9 }
 0x235   : > { %1718 = vmatprep.mubr.bf16.mxu0 %v1248_v53 }
 0x237   : > { %1703 = vmatpush1.bf16.msra.mxu0 %v2675_v6 }
 0x238   : > { %1704 = vmatprep.subr.bf16.mxu0 %v2680_v52 }
 0x23b   : > { %1705 = vmatpush1.bf16.msra.mxu0 %v2678_v41 }
 0x23c   : > { %1706 = vmatprep.subr.bf16.mxu0 %v2683_v42 }
 0x23f   : > { %1707 = vmatpush1.bf16.msra.mxu0 %v2681_v20 }
 0x240   : > { %1708 = vmatprep.subr.bf16.mxu0 %v2686_v47 }
 0x243   : > { %1709 = vmatpush1.bf16.msra.mxu0 %v2684_v48 }
 0x244   : > { %1710 = vmatprep.subr.bf16.mxu0 %v2689_v29 }
 0x247   : > { %1711 = vmatpush1.bf16.msra.mxu0 %v2687_v40 }
 0x248   : > { %1712 = vmatprep.subr.bf16.mxu0 %v2692_v30 }
 0x24b   : > { %1713 = vmatpush1.bf16.msra.mxu0 %v2690_v43 }
 0x24c   : > { %1714 = vmatprep.subr.bf16.mxu0 %v2695_v54 }
 0x24f   : > { %1715 = vmatpush1.bf16.msra.mxu0 %v2693_v39 }
 0x250   : > { %1716 = vmatprep.subr.bf16.mxu0 %v2698_v46 }
 0x253   : > { %1717 = vmatpush1.bf16.msra.mxu0 %v2696_v2 }
 0x256   : > { %1719 = vmatmul.mubr.bf16.vlgmr.msra.gmra.mrb[0].mxu0 %v1247_v59 }
 0x329   : > { %v1720_v5 = vpop.f32.mrb[0].mxu0 }
 0x32a   : > { %v2294_v11 = vadd.f32 %v1720_v5, %v1638_v3  ;;  %v1722_v13 = vpop.f32.mrb[1].mxu0 }
 0x32b   : > { %v2295_v14 = vadd.f32 %v1722_v13, %v1642_v4  ;;  %v1724_v32 = vpop.f32.mrb[2].mxu0 }
 0x32c   : > { %vm1727_vm4 = vcmp.gt.f32.partialorder %v2294_v11, 0.0  ;;  %v1729_v15 = vmul.f32 0.1, %v2294_v11  ;;  %v1725_v12 = vpop.f32.mrb[3].mxu0 }
 0x32d   : > { %vm1728_vm5 = vcmp.gt.f32.partialorder %v2295_v14, 0.0  ;;  %v1730_v16 = vmul.f32 0.1, %v2295_v14 }
 0x32e   : > { %v1731_v35 = vsel %vm1727_vm4, %v2294_v11, %v1729_v15 }
 0x32f   : > { %v1732_v17 = vsel %vm1728_vm5, %v2295_v14, %v1730_v16  ;;  %v1733_v49 = vpack.c.bf16 %v1731_v35, %v1731_v35 }
 0x330   : > { %v1734_v7 = vpack.c.bf16 %v1732_v17, %v1732_v17 }
 0x332   : > { %1896 = vmatprep.mubr.bf16.mxu1 %v1734_v7 }
 0x333   : > { %1897 = vmatmul.mubr.bf16.vlgmr.msra.gmra.mrb[8].mxu1 %v1733_v49 }
 0x334   : > { %2283 = vmatpush3.bf16.msra.mxu1 %v2715_v8  ;;  %2290 = vmatprep.mubr.msk.bf16.mxu1 %vm2857_vm6, %v2856_v60 }
 0x335   : > { %2284 = vmatprep.subr.bf16.mxu1 %v2856_v60 }
 0x338   : > { %2285 = vmatpush3.bf16.msra.mxu1 %v2716_v50 }
 0x339   : > { %2286 = vmatprep.subr.bf16.mxu1 %v2856_v60 }
 0x33c   : > { %2287 = vmatpush3.bf16.msra.mxu1 %v2717_v18 }
 0x33d   : > { %2288 = vmatprep.subr.bf16.mxu1 %v2856_v60 }
 0x340   : > { %2289 = vmatpush3.bf16.msra.mxu1 %v2718_v31 }
 0x406   : > { %v2271_v0 = vpop.f32.mrb[8].mxu1 }
 0x407   : > { %v2272_v58 = vpop.f32.mrb[9].mxu1 }
 0x408   : > { %v2273_v1 = vadd.f32 %v2272_v58, %v2271_v0  ;;  %v2274_v19 = vpop.f32.mrb[10].mxu1 }
 0x409   : > { %v2275_v21 = vpop.f32.mrb[11].mxu1 }
 0x40a   : > { %v1899_v38 = vadd.f32 %v2273_v1, %v1767_v57 }
 0x40c   : > { %vm1904_vm7 = vcmp.gt.f32.partialorder %v1899_v38, 0.0  ;;  %v1905_v22 = vmul.f32 0.1, %v1899_v38 }
 0x40e   : > { %v1906_v23 = vsel %vm1904_vm7, %v1899_v38, %v1905_v22 }
 0x40f   : > { %v1907_v24 = vpack.c.bf16 %v1906_v23, %v1906_v23 }
 0x411   : > { %2291 = vmatmul.mubr.msk.bf16.vlgmr.msra.gmra.mrb[12].mxu1 %vm1941_vm8, %v1907_v24 }
 0x4e4   : > { %v1979_v10 = vpop.f32.mrb[12].mxu1 }
 0x4e5   : > { %v1980_v26 = vadd.f32 %v1979_v10, %v1916_v25  ;;  %v2292_v27 = vpop.f32.mrb[13].mxu1 }
 0x4e6   : > { %v1982_v36 = vpop.f32.mrb[14].mxu1 }
 0x4e7   : > { %1985 = vst [vmem:[%s3037_s15] sm:$0x1] %v1980_v26  ;;  %v2293_v37 = vpop.f32.mrb[15].mxu1 }
 0x4e8 PF: > { %s2213_s29 = sshll.u32 %s2833_s21, 4  ;;  %s1999_s14 = sshll.u32 %s3037_s15, 4  ;;  %s2000_s14 = int_to_ptr.vmem [resolvable:$true] %s1999_s14 }
 0x4e9   : > { %s3370_s12 = scalar_lea.hbm %s3431_s11, %s2213_s29  ;;  %s1987_s25 = scalar_lea.sflag [#allocation5], %s415_s23 }
 0x4ea   : > { %s2747_s20 = scalar_lea.vmem %s2000_s14, 16  ;;  %p3453_p2 = scmp.ne.s32.totalorder %s3443_s30, 0 }
 0x4eb   : > { %p2748_p0 = scmp.ne.s32.totalorder %s2000_s14, %s2747_s20  ;;  %s2858_s22 = smov [#allocation6]  }
 0x4ec   : > { %s2751_s16 = sshll.u32 %s2858_s22, 4  ;;  %s2752_s16 = int_to_ptr.vmem [resolvable:$false] %s2751_s16 }
 0x4ed   : > { %p2749_p5 = pnand %p2748_p0, %p3453_p2  ;;  %s2753_s27 = scalar_lea.vmem %s2752_s16, 32 }
 0x4ee   : > { %p2754_p7 = scmp.lt.s32.totalorder %s2000_s14, %s2752_s16  ;;  %p2755_p8 = scmp.lt.s32.totalorder %s2753_s27, %s2747_s20 }
 0x4ef   : > { %p2750_p6 = pneg %p2749_p5 }
 0x4f0   : > { %p2756_p11 = por %p2755_p8, %p2754_p7 }
 0x4f2   : > { %p2757_p12 = pnand %p2756_p11, %p2750_p6 }
 0x4f4   : > { %2760 = shalt.err (!%p2757_p12)
}
 0x4f5   : > { %s2761_s21 = scalar_lea.hbm %s3370_s12, 16  ;;  %s2765_s13 = scalar_lea.hbm %s3431_s11, 32 }
 0x4f6   : > { %p2762_p1 = scmp.ne.s32.totalorder %s3370_s12, %s2761_s21  ;;  %p2766_p9 = scmp.lt.u32.totalorder %s3370_s12, %s3431_s11 }
 0x4f7   : > { %p2767_p10 = scmp.lt.u32.totalorder %s2765_s13, %s2761_s21  ;;  %p2769_p0 = scmp.lt.u32.totalorder %s2761_s21, %s3370_s12 }
 0x4f8   : > { %p2763_p4 = pnand %p2762_p1, %p3453_p2 }
 0x4f9   : > { %p2768_p13 = por %p2767_p10, %p2766_p9 }
 0x4fa   : > { %p2764_p3 = pneg %p2763_p4 }
 0x4fb   : > { %p2770_p5 = por %p2769_p0, %p2768_p13 }
 0x4fd   : > { %p2771_p6 = pnand %p2770_p5, %p2764_p3 }
 0x4ff   : > { %2774 = shalt.err (!%p2771_p6)
}
 0x500   : > { %2304 = dma.vmem_to_hbm [thread:$0]  (%p3453_p2), %s2000_s14, 16, %s3370_s12, %s1987_s25  }
 0x501 PF: > { %s3454_s28 = sld [smem:[#allocation13_spill]]  ;;  %p2316_p7 = scmp.ge.s32.totalorder %s2845_s24, 2 }
 0x502   : > { %s2011_s20 = sand.u32 1, %s2817_s17  }
 0x503   : > { %s2012_s22 = scalar_lea.sflag [#allocation5], %s2011_s20 }
 0x507   : > { %p3455_p8 = scmp.ne.s32.totalorder %s3454_s28, 0 }
 0x509   : > { %p2311_p11 = pnand %p2316_p7, %p3455_p8 }
 0x50b   : > { %2812 = dma.done.wait (!%p2311_p11), %s2012_s22, 16  }
 0x50c   : > { %2814 = vsyncadd (!%p2311_p11), %s2012_s22, 4294967280  ;;  %s25_s24 = sadd.s32 1, %s2845_s24   ;;  %s3456_s16 = sld [smem:[#allocation14_spill]] }
 0x50d   : > { %p22_p12 = scmp.ge.s32.totalorder %s25_s24, 6   ;;  %s3457_s20 = sld [smem:[#allocation9_spill]] }
 0x50e   : > { %s3458_s21 = sld [smem:[#allocation10_spill]]  ;;  %s3459_s22 = sld [smem:[#allocation11_spill]] }
 0x50f   : > { %s3460_s23 = sld [smem:[#allocation12_spill]]  ;;  %s3461_s17 = smov %s2821_s18 }
 0x510   : > { %s3462_s18 = smov %s2825_s19  ;;  %24 = sbr.rel (!%p22_p12) target bundleno = 6 (0x6), region = 112 }
 0x512   : > { %s3463_s19 = smov %s3456_s16 }
 0x517   :  { %2016 = vsyncpa [#allocation4], 1 }
 0x518   :  { %2018 = vsyncpa [#allocation4 + $0x1], 1 }
 0x519   :  { %2019 = vsyncpa [#allocation5], 1 }
 0x51a   :  { %2021 = vsyncpa [#allocation5 + $0x1], 1 }

</bundles_post_ra>
